<compile_context>
chip_gen: v7x
topology: tpu7x:2x2x1
jax: 0.10.0
libtpu: 0.0.40
codegen_flags: <defaults>
</compile_context>

<pallas_src>
import functools

import jax
import jax.numpy as jnp
from jax import lax
from jax.experimental import pallas as pl
from jax.experimental.pallas import tpu as pltpu


def _round_up(x, m):
    return ((x + m - 1) // m) * m


def _full_spec(shape):
    """BlockSpec covering the whole array (trivial grid=(1,))."""
    ndim = len(shape)
    return pl.BlockSpec(shape, lambda i, _n=ndim: (0,) * _n)


# ----------------------------------------------------------------------------
# Fused kernel: wavefront LSTM over all layers + fc + sigmoid head.
# Lane layout of stacked state: lanes [l*H, (l+1)*H) of h_stack/c_stack hold
# layer l.  Gate layout of the 4*L*H gate vector: [i | f | o | g], each group
# L*H lanes wide (layer-major inside the group) -> every slice is vreg-aligned.
# ----------------------------------------------------------------------------
def _tweet_decider_kernel(emb_ref, wih0_ref, wbig_ref, bias_ref,
                          h0_ref, c0_ref, fcw_ref, fcb_ref,
                          fc_out_ref, hT_ref, cT_ref,
                          gproj_sc, seq_sc,
                          *, num_layers, seq_len, batch, hidden_dim):
    L, T, B, H = num_layers, seq_len, batch, hidden_dim
    GH = L * H                      # 128: stacked-state lane width

    # Hoisted off the recurrence: layer-0 input projection for all timesteps
    # plus every layer's (b_ih + b_hh) bias, already in gate-grouped layout.
    gproj_sc[...] = (jnp.dot(emb_ref[...], wih0_ref[...],
                             preferred_element_type=jnp.float32)
                     + bias_ref[...])

    w_big = wbig_ref[...]           # (GH, 4*GH) loop-invariant MXU RHS
    h_stack = h0_ref[...]           # (B, GH)
    c_stack = c0_ref[...]           # (B, GH)
    lane = lax.broadcasted_iota(jnp.int32, (B, GH), 1)

    n_waves = T + L - 1
    for w in range(n_waves):
        # Layer l is active at wave w iff 0 <= w - l < T.
        t0 = min(w, T - 1)          # clamped row; inactive layer 0 is masked
        gates = gproj_sc[t0 * B:(t0 + 1) * B, :] + jnp.dot(
            h_stack, w_big, preferred_element_type=jnp.float32)   # (B, 4*GH)

        # Full-vreg activations; all slices at multiples of 128 lanes.
        sig = jax.nn.sigmoid(gates[:, :3 * GH])
        i_all = sig[:, 0 * GH:1 * GH]
        f_all = sig[:, 1 * GH:2 * GH]
        o_all = sig[:, 2 * GH:3 * GH]
        g_all = jnp.tanh(gates[:, 3 * GH:])

        c_new = f_all * c_stack + i_all * g_all
        h_new = o_all * jnp.tanh(c_new)

        lo = max(0, w - T + 1) * H          # first active lane
        hi = min(L, w + 1) * H              # one past last active lane
        if lo == 0 and hi == GH:            # all layers active: skip the select
            c_stack, h_stack = c_new, h_new
        else:
            active = (lane >= lo) & (lane < hi)
            c_stack = jnp.where(active, c_new, c_stack)
            h_stack = jnp.where(active, h_new, h_stack)

        t_last = w - (L - 1)                # timestep produced by the last layer
        if t_last >= 0:
            seq_sc[t_last * B:(t_last + 1) * B, :] = h_stack

    hT_ref[...] = h_stack
    cT_ref[...] = c_stack

    # fc + sigmoid over the (stacked) last-layer sequence.  fcw_big is nonzero
    # only in the last layer's rows, so no lane slice is needed; output block
    # is 128-lane dense (classes padded in the wrapper).
    fc_out_ref[...] = jax.nn.sigmoid(
        jnp.dot(seq_sc[...], fcw_ref[...], preferred_element_type=jnp.float32)
        + fcb_ref[...])


# ----------------------------------------------------------------------------
# One-time parameter packing (outside jit): 8 kernel inputs instead of 17.
# ----------------------------------------------------------------------------
def pack_params(params):
    L = len(params["lstm"])
    H = params["lstm"][0]["w_hh_t"].shape[0]
    D = params["embed"].shape[1]
    C = params["fc_w_t"].shape[1]
    GH = L * H
    G4 = 4 * GH
    C_pad = _round_up(C, 128)
    assert GH % 128 == 0, (
        "num_layers*hidden_dim must be a multiple of 128 for vreg-aligned "
        "gate groups (got %d)" % GH)

    # Source gate column order in w_*_t is PyTorch's [i | f | g | o];
    # destination group order is [i | f | o | g] (sigmoid gates contiguous).
    src_off = {"i": 0 * H, "f": 1 * H, "g": 2 * H, "o": 3 * H}
    dst_grp = {"i": 0, "f": 1, "o": 2, "g": 3}

    def scatter_gates(big, src, row0, l):
        for gate, q in dst_grp.items():
            s = src_off[gate]
            d = q * GH + l * H
            big = big.at[row0:row0 + src.shape[0], d:d + H].set(src[:, s:s + H])
        return big

    w_big = jnp.zeros((GH, G4), jnp.float32)
    bias_big = jnp.zeros((1, G4), jnp.float32)
    for l, lp in enumerate(params["lstm"]):
        w_big = scatter_gates(w_big, lp["w_hh_t"], l * H, l)            # recurrent
        if l > 0:
            w_big = scatter_gates(w_big, lp["w_ih_t"], (l - 1) * H, l)  # feed-in
        bias_big = scatter_gates(bias_big, lp["bias"], 0, l)

    wih0_big = scatter_gates(jnp.zeros((D, G4), jnp.float32),
                             params["lstm"][0]["w_ih_t"], 0, 0)

    fcw_big = jnp.zeros((GH, C_pad), jnp.float32).at[
        (L - 1) * H:L * H, :C].set(params["fc_w_t"])
    fcb_big = jnp.zeros((1, C_pad), jnp.float32).at[:, :C].set(params["fc_b"])

    return {"embed": params["embed"], "wih0_big": wih0_big, "w_big": w_big,
            "bias_big": bias_big, "fcw_big": fcw_big, "fcb_big": fcb_big}


# ----------------------------------------------------------------------------
# Wrapper: embedding gather, state packing, kernel call, literal-PyTorch tail.
# ----------------------------------------------------------------------------
@functools.partial(jax.jit, static_argnames=("num_classes",))
def tweet_decider_forward(x_tokens, hidden, packed, *, num_classes):
    """x_tokens: (T, B) int32; hidden: (h0, c0) each (L, B, H)."""
    h0_all, c0_all = hidden
    T, B = x_tokens.shape
    L, _, H = h0_all.shape
    D = packed["embed"].shape[1]
    GH = L * H
    C_pad = packed["fcw_big"].shape[1]

    # Embedding lookup (gather) kept as plain-JAX glue; flatten time-major
    # (T, B, D) -> (T*B, D) in XLA so the kernel never reshapes.
    embeds_flat = jnp.take(packed["embed"], x_tokens, axis=0).astype(
        jnp.float32).reshape(T * B, D)

    # Lane-stack the per-layer initial states: (L, B, H) -> (B, L*H).
    h0_packed = h0_all.transpose(1, 0, 2).reshape(B, GH)
    c0_packed = c0_all.transpose(1, 0, 2).reshape(B, GH)

    inputs = [embeds_flat, packed["wih0_big"], packed["w_big"],
              packed["bias_big"], h0_packed, c0_packed,
              packed["fcw_big"], packed["fcb_big"]]

    kernel = functools.partial(_tweet_decider_kernel, num_layers=L, seq_len=T,
                               batch=B, hidden_dim=H)

    fc_out, hT_p, cT_p = pl.pallas_call(
        kernel,
        out_shape=(
            jax.ShapeDtypeStruct((T * B, C_pad), jnp.float32),
            jax.ShapeDtypeStruct((B, GH), jnp.float32),
            jax.ShapeDtypeStruct((B, GH), jnp.float32),
        ),
        grid_spec=pltpu.PrefetchScalarGridSpec(
            num_scalar_prefetch=0,
            grid=(1,),
            in_specs=[_full_spec(a.shape) for a in inputs],
            out_specs=[
                _full_spec((T * B, C_pad)),
                _full_spec((B, GH)),
                _full_spec((B, GH)),
            ],
            scratch_shapes=[
                pltpu.VMEM((T * B, 4 * GH), jnp.float32),  # hoisted gproj0+bias
                pltpu.VMEM((T * B, GH), jnp.float32),      # last-layer sequence
            ],
        ),
        compiler_params=pltpu.CompilerParams(
            dimension_semantics=("arbitrary",)),
    )(*inputs)

    # Literal PyTorch tail: view(-1, H) -> fc -> sigmoid -> view(B, -1)[:, -1].
    # (Faithful to the module even though only one padded column is consumed.)
    out = fc_out[:, :num_classes].reshape(B, -1)[:, -1]      # (B,)
    h_T = hT_p.reshape(B, L, H).transpose(1, 0, 2)           # (L, B, H)
    c_T = cT_p.reshape(B, L, H).transpose(1, 0, 2)
    return out, (h_T, c_T)


# ----------------------------------------------------------------------------
# Pure-JAX reference (for correctness checking).
# ----------------------------------------------------------------------------
def _reference_forward(x_tokens, hidden, params):
    h0_all, c0_all = hidden
    T, B = x_tokens.shape
    H = h0_all.shape[-1]
    embeds = jnp.take(params["embed"], x_tokens, axis=0)
    layer_in = embeds
    hs, cs = [], []
    for l, lp in enumerate(params["lstm"]):
        h, c = h0_all[l], c0_all[l]
        outs = []
        for t in range(T):
            gates = layer_in[t] @ lp["w_ih_t"] + h @ lp["w_hh_t"] + lp["bias"]
            i_g = jax.nn.sigmoid(gates[:, :H])
            f_g = jax.nn.sigmoid(gates[:, H:2 * H])
            g_g = jnp.tanh(gates[:, 2 * H:3 * H])
            o_g = jax.nn.sigmoid(gates[:, 3 * H:])
            c = f_g * c + i_g * g_g
            h = o_g * jnp.tanh(c)
            outs.append(h)
        layer_in = jnp.stack(outs, axis=0)
        hs.append(h)
        cs.append(c)
    flat = layer_in.reshape(-1, H)
    out = jax.nn.sigmoid(flat @ params["fc_w_t"] + params["fc_b"])
    out = out.reshape(B, -1)[:, -1]
    return out, (jnp.stack(hs, 0), jnp.stack(cs, 0))


# ----------------------------------------------------------------------------
# Deterministic parameter construction (shapes from the module __init__).
# ----------------------------------------------------------------------------
def make_params(key, vocab_size, input_dim, hidden_dim, num_layers, num_classes):
    keys = jax.random.split(key, 2 + 4 * num_layers + 2)
    k_iter = iter(keys)
    scale = 1.0 / jnp.sqrt(hidden_dim)

    params = {
        "embed": jax.random.normal(next(k_iter), (vocab_size, input_dim),
                                   jnp.float32),
        "lstm": [],
        "fc_w_t": jax.random.uniform(next(k_iter), (hidden_dim, num_classes),
                                     jnp.float32, -scale, scale),
    }
    params["fc_b"] = jax.random.uniform(keys[-1], (1, num_classes),
                                        jnp.float32, -scale, scale)
    for l in range(num_layers):
        in_dim = input_dim if l == 0 else hidden_dim
        w_ih = jax.random.uniform(next(k_iter), (in_dim, 4 * hidden_dim),
                                  jnp.float32, -scale, scale)
        w_hh = jax.random.uniform(next(k_iter), (hidden_dim, 4 * hidden_dim),
                                  jnp.float32, -scale, scale)
        b_ih = jax.random.uniform(next(k_iter), (1, 4 * hidden_dim),
                                  jnp.float32, -scale, scale)
        b_hh = jax.random.uniform(next(k_iter), (1, 4 * hidden_dim),
                                  jnp.float32, -scale, scale)
        params["lstm"].append(
            {"w_ih_t": w_ih, "w_hh_t": w_hh, "bias": b_ih + b_hh})
    return params


if __name__ == "__main__":
    vocab_size = 64
    input_dim = 16     # embedding dim
    hidden_dim = 32
    num_layers = 4     # module hard-codes self.num_layers = 4
    num_classes = 2
    T, B = 8, 2        # seq_len, batch

    key = jax.random.PRNGKey(0)
    k_params, k_tokens = jax.random.split(key)

    params = make_params(k_params, vocab_size, input_dim, hidden_dim,
                         num_layers, num_classes)
    packed = pack_params(params)      # one-time packing, outside jit
    x_tokens = jax.random.randint(k_tokens, (T, B), 0, vocab_size, jnp.int32)

    # init_hidden: zeros of shape (num_layers, batch, hidden_dim)
    hidden = (jnp.zeros((num_layers, B, hidden_dim), jnp.float32),
              jnp.zeros((num_layers, B, hidden_dim), jnp.float32))

    out, hidden_out = tweet_decider_forward(x_tokens, hidden, packed,
                                            num_classes=num_classes)
    jax.block_until_ready(out)
    jax.block_until_ready(hidden_out)

    assert out.shape == (B,)
    assert hidden_out[0].shape == (num_layers, B, hidden_dim)
    assert hidden_out[1].shape == (num_layers, B, hidden_dim)

    # Correctness check against a pure-JAX reference.
    ref_out, (ref_h, ref_c) = _reference_forward(x_tokens, hidden, params)
    assert jnp.allclose(out, ref_out, atol=5e-3), (out, ref_out)
    assert jnp.allclose(hidden_out[0], ref_h, atol=5e-3)
    assert jnp.allclose(hidden_out[1], ref_c, atol=5e-3)

    print("KERNEL_OK")
</pallas_src>

<mosaic_0001>
module attributes {stable_mosaic.version = 11 : i64} {
  func.func @_tweet_decider_kernel(%arg0: i32, %arg1: memref<16x16xf32, #tpu.memory_space<vmem>>, %arg2: memref<16x512xf32, #tpu.memory_space<vmem>>, %arg3: memref<128x512xf32, #tpu.memory_space<vmem>>, %arg4: memref<1x512xf32, #tpu.memory_space<vmem>>, %arg5: memref<2x128xf32, #tpu.memory_space<vmem>>, %arg6: memref<2x128xf32, #tpu.memory_space<vmem>>, %arg7: memref<128x128xf32, #tpu.memory_space<vmem>>, %arg8: memref<1x128xf32, #tpu.memory_space<vmem>>, %arg9: memref<16x128xf32, #tpu.memory_space<vmem>>, %arg10: memref<2x128xf32, #tpu.memory_space<vmem>>, %arg11: memref<2x128xf32, #tpu.memory_space<vmem>>, %arg12: memref<16x512xf32, #tpu.memory_space<vmem>>, %arg13: memref<16x128xf32, #tpu.memory_space<vmem>>) attributes {dimension_semantics = [#tpu.dimension_semantics<arbitrary>], iteration_bounds = array<i64: 1>, scalar_prefetch = 0 : i64, scratch_operands = 2 : i64, tpu.core_type = #tpu.core_type<tc>, window_params = [{pipeline_mode = #tpu.pipeline_mode<synchronous>, transform_indices = @transform_0, window_bounds = array<i64: 16, 16>}, {pipeline_mode = #tpu.pipeline_mode<synchronous>, transform_indices = @transform_1, window_bounds = array<i64: 16, 512>}, {pipeline_mode = #tpu.pipeline_mode<synchronous>, transform_indices = @transform_2, window_bounds = array<i64: 128, 512>}, {pipeline_mode = #tpu.pipeline_mode<synchronous>, transform_indices = @transform_3, window_bounds = array<i64: 1, 512>}, {pipeline_mode = #tpu.pipeline_mode<synchronous>, transform_indices = @transform_4, window_bounds = array<i64: 2, 128>}, {pipeline_mode = #tpu.pipeline_mode<synchronous>, transform_indices = @transform_5, window_bounds = array<i64: 2, 128>}, {pipeline_mode = #tpu.pipeline_mode<synchronous>, transform_indices = @transform_6, window_bounds = array<i64: 128, 128>}, {pipeline_mode = #tpu.pipeline_mode<synchronous>, transform_indices = @transform_7, window_bounds = array<i64: 1, 128>}, {pipeline_mode = #tpu.pipeline_mode<synchronous>, transform_indices = @transform_8, window_bounds = array<i64: 16, 128>}, {pipeline_mode = #tpu.pipeline_mode<synchronous>, transform_indices = @transform_9, window_bounds = array<i64: 2, 128>}, {pipeline_mode = #tpu.pipeline_mode<synchronous>, transform_indices = @transform_10, window_bounds = array<i64: 2, 128>}]} {
    %c0 = arith.constant 0 : index
    %c0_0 = arith.constant 0 : index
    %0 = vector.load %arg1[%c0, %c0_0] : memref<16x16xf32, #tpu.memory_space<vmem>>, vector<16x16xf32>
    %c0_1 = arith.constant 0 : index
    %c0_2 = arith.constant 0 : index
    %1 = vector.load %arg2[%c0_1, %c0_2] : memref<16x512xf32, #tpu.memory_space<vmem>>, vector<16x512xf32>
    %cst = arith.constant dense<0.000000e+00> : vector<16x512xf32>
    %2 = tpu.matmul %0, %1, %cst {dimension_numbers = #tpu.dot_dimension_numbers<[1], [0], [0], [1], [0, 0, 1, 1], [], []>} : vector<16x16xf32>, vector<16x512xf32>, vector<16x512xf32> -> vector<16x512xf32>
    %c0_3 = arith.constant 0 : index
    %c0_4 = arith.constant 0 : index
    %3 = vector.load %arg4[%c0_3, %c0_4] : memref<1x512xf32, #tpu.memory_space<vmem>>, vector<1x512xf32>
    %4 = vector.broadcast %3 : vector<1x512xf32> to vector<16x512xf32>
    %5 = arith.addf %2, %4 : vector<16x512xf32>
    %c0_5 = arith.constant 0 : index
    %c0_6 = arith.constant 0 : index
    %6 = vector.load %arg12[%c0_5, %c0_6] : memref<16x512xf32, #tpu.memory_space<vmem>>, vector<16x512xf32>
    tpu.vector_store %arg12[%c0_5, %c0_6], %5 {strides = array<i32>} : memref<16x512xf32, #tpu.memory_space<vmem>>, vector<16x512xf32>,
    %c0_7 = arith.constant 0 : index
    %c0_8 = arith.constant 0 : index
    %7 = vector.load %arg3[%c0_7, %c0_8] : memref<128x512xf32, #tpu.memory_space<vmem>>, vector<128x512xf32>
    %c0_9 = arith.constant 0 : index
    %c0_10 = arith.constant 0 : index
    %8 = vector.load %arg5[%c0_9, %c0_10] : memref<2x128xf32, #tpu.memory_space<vmem>>, vector<2x128xf32>
    %c0_11 = arith.constant 0 : index
    %c0_12 = arith.constant 0 : index
    %9 = vector.load %arg6[%c0_11, %c0_12] : memref<2x128xf32, #tpu.memory_space<vmem>>, vector<2x128xf32>
    %10 = tpu.iota {dimensions = array<i32: 1>} : vector<2x128xi32>
    %c0_13 = arith.constant 0 : index
    %c0_14 = arith.constant 0 : index
    %11 = vector.load %arg12[%c0_13, %c0_14] : memref<16x512xf32, #tpu.memory_space<vmem>>, vector<2x512xf32>
    %cst_15 = arith.constant dense<0.000000e+00> : vector<2x512xf32>
    %12 = tpu.matmul %8, %7, %cst_15 {dimension_numbers = #tpu.dot_dimension_numbers<[1], [0], [0], [1], [0, 0, 1, 1], [], []>} : vector<2x128xf32>, vector<128x512xf32>, vector<2x512xf32> -> vector<2x512xf32>
    %13 = arith.addf %11, %12 : vector<2x512xf32>
    %14 = vector.extract_strided_slice %13 {offsets = [0, 0], sizes = [2, 384], strides = [1, 1]} : vector<2x512xf32> to vector<2x384xf32>
    %15 = arith.negf %14 : vector<2x384xf32>
    %16 = math.exp %15 : vector<2x384xf32>
    %cst_16 = arith.constant 1.000000e+00 : f32
    %17 = vector.broadcast %cst_16 : f32 to vector<2x384xf32>
    %18 = arith.addf %17, %16 : vector<2x384xf32>
    %19 = arith.divf %17, %18 : vector<2x384xf32>
    %20 = vector.extract_strided_slice %19 {offsets = [0, 0], sizes = [2, 128], strides = [1, 1]} : vector<2x384xf32> to vector<2x128xf32>
    %21 = vector.extract_strided_slice %19 {offsets = [0, 128], sizes = [2, 128], strides = [1, 1]} : vector<2x384xf32> to vector<2x128xf32>
    %22 = vector.extract_strided_slice %19 {offsets = [0, 256], sizes = [2, 128], strides = [1, 1]} : vector<2x384xf32> to vector<2x128xf32>
    %23 = vector.extract_strided_slice %13 {offsets = [0, 384], sizes = [2, 128], strides = [1, 1]} : vector<2x512xf32> to vector<2x128xf32>
    %24 = math.tanh %23 : vector<2x128xf32>
    %25 = arith.mulf %21, %9 : vector<2x128xf32>
    %26 = arith.mulf %20, %24 : vector<2x128xf32>
    %27 = arith.addf %25, %26 : vector<2x128xf32>
    %28 = math.tanh %27 : vector<2x128xf32>
    %29 = arith.mulf %22, %28 : vector<2x128xf32>
    %c0_i32 = arith.constant 0 : i32
    %30 = vector.broadcast %c0_i32 : i32 to vector<2x128xi32>
    %31 = arith.cmpi sge, %10, %30 : vector<2x128xi32>
    %c32_i32 = arith.constant 32 : i32
    %32 = vector.broadcast %c32_i32 : i32 to vector<2x128xi32>
    %33 = arith.cmpi slt, %10, %32 : vector<2x128xi32>
    %34 = arith.andi %31, %33 : vector<2x128xi1>
    %35 = arith.select %34, %27, %9 : vector<2x128xi1>, vector<2x128xf32>
    %36 = arith.select %34, %29, %8 : vector<2x128xi1>, vector<2x128xf32>
    %c2 = arith.constant 2 : index
    %c0_17 = arith.constant 0 : index
    %37 = vector.load %arg12[%c2, %c0_17] : memref<16x512xf32, #tpu.memory_space<vmem>>, vector<2x512xf32>
    %cst_18 = arith.constant dense<0.000000e+00> : vector<2x512xf32>
    %38 = tpu.matmul %36, %7, %cst_18 {dimension_numbers = #tpu.dot_dimension_numbers<[1], [0], [0], [1], [0, 0, 1, 1], [], []>} : vector<2x128xf32>, vector<128x512xf32>, vector<2x512xf32> -> vector<2x512xf32>
    %39 = arith.addf %37, %38 : vector<2x512xf32>
    %40 = vector.extract_strided_slice %39 {offsets = [0, 0], sizes = [2, 384], strides = [1, 1]} : vector<2x512xf32> to vector<2x384xf32>
    %41 = arith.negf %40 : vector<2x384xf32>
    %42 = math.exp %41 : vector<2x384xf32>
    %cst_19 = arith.constant 1.000000e+00 : f32
    %43 = vector.broadcast %cst_19 : f32 to vector<2x384xf32>
    %44 = arith.addf %43, %42 : vector<2x384xf32>
    %45 = arith.divf %43, %44 : vector<2x384xf32>
    %46 = vector.extract_strided_slice %45 {offsets = [0, 0], sizes = [2, 128], strides = [1, 1]} : vector<2x384xf32> to vector<2x128xf32>
    %47 = vector.extract_strided_slice %45 {offsets = [0, 128], sizes = [2, 128], strides = [1, 1]} : vector<2x384xf32> to vector<2x128xf32>
    %48 = vector.extract_strided_slice %45 {offsets = [0, 256], sizes = [2, 128], strides = [1, 1]} : vector<2x384xf32> to vector<2x128xf32>
    %49 = vector.extract_strided_slice %39 {offsets = [0, 384], sizes = [2, 128], strides = [1, 1]} : vector<2x512xf32> to vector<2x128xf32>
    %50 = math.tanh %49 : vector<2x128xf32>
    %51 = arith.mulf %47, %35 : vector<2x128xf32>
    %52 = arith.mulf %46, %50 : vector<2x128xf32>
    %53 = arith.addf %51, %52 : vector<2x128xf32>
    %54 = math.tanh %53 : vector<2x128xf32>
    %55 = arith.mulf %48, %54 : vector<2x128xf32>
    %c0_i32_20 = arith.constant 0 : i32
    %56 = vector.broadcast %c0_i32_20 : i32 to vector<2x128xi32>
    %57 = arith.cmpi sge, %10, %56 : vector<2x128xi32>
    %c64_i32 = arith.constant 64 : i32
    %58 = vector.broadcast %c64_i32 : i32 to vector<2x128xi32>
    %59 = arith.cmpi slt, %10, %58 : vector<2x128xi32>
    %60 = arith.andi %57, %59 : vector<2x128xi1>
    %61 = arith.select %60, %53, %35 : vector<2x128xi1>, vector<2x128xf32>
    %62 = arith.select %60, %55, %36 : vector<2x128xi1>, vector<2x128xf32>
    %c4 = arith.constant 4 : index
    %c0_21 = arith.constant 0 : index
    %63 = vector.load %arg12[%c4, %c0_21] : memref<16x512xf32, #tpu.memory_space<vmem>>, vector<2x512xf32>
    %cst_22 = arith.constant dense<0.000000e+00> : vector<2x512xf32>
    %64 = tpu.matmul %62, %7, %cst_22 {dimension_numbers = #tpu.dot_dimension_numbers<[1], [0], [0], [1], [0, 0, 1, 1], [], []>} : vector<2x128xf32>, vector<128x512xf32>, vector<2x512xf32> -> vector<2x512xf32>
    %65 = arith.addf %63, %64 : vector<2x512xf32>
    %66 = vector.extract_strided_slice %65 {offsets = [0, 0], sizes = [2, 384], strides = [1, 1]} : vector<2x512xf32> to vector<2x384xf32>
    %67 = arith.negf %66 : vector<2x384xf32>
    %68 = math.exp %67 : vector<2x384xf32>
    %cst_23 = arith.constant 1.000000e+00 : f32
    %69 = vector.broadcast %cst_23 : f32 to vector<2x384xf32>
    %70 = arith.addf %69, %68 : vector<2x384xf32>
    %71 = arith.divf %69, %70 : vector<2x384xf32>
    %72 = vector.extract_strided_slice %71 {offsets = [0, 0], sizes = [2, 128], strides = [1, 1]} : vector<2x384xf32> to vector<2x128xf32>
    %73 = vector.extract_strided_slice %71 {offsets = [0, 128], sizes = [2, 128], strides = [1, 1]} : vector<2x384xf32> to vector<2x128xf32>
    %74 = vector.extract_strided_slice %71 {offsets = [0, 256], sizes = [2, 128], strides = [1, 1]} : vector<2x384xf32> to vector<2x128xf32>
    %75 = vector.extract_strided_slice %65 {offsets = [0, 384], sizes = [2, 128], strides = [1, 1]} : vector<2x512xf32> to vector<2x128xf32>
    %76 = math.tanh %75 : vector<2x128xf32>
    %77 = arith.mulf %73, %61 : vector<2x128xf32>
    %78 = arith.mulf %72, %76 : vector<2x128xf32>
    %79 = arith.addf %77, %78 : vector<2x128xf32>
    %80 = math.tanh %79 : vector<2x128xf32>
    %81 = arith.mulf %74, %80 : vector<2x128xf32>
    %c0_i32_24 = arith.constant 0 : i32
    %82 = vector.broadcast %c0_i32_24 : i32 to vector<2x128xi32>
    %83 = arith.cmpi sge, %10, %82 : vector<2x128xi32>
    %c96_i32 = arith.constant 96 : i32
    %84 = vector.broadcast %c96_i32 : i32 to vector<2x128xi32>
    %85 = arith.cmpi slt, %10, %84 : vector<2x128xi32>
    %86 = arith.andi %83, %85 : vector<2x128xi1>
    %87 = arith.select %86, %79, %61 : vector<2x128xi1>, vector<2x128xf32>
    %88 = arith.select %86, %81, %62 : vector<2x128xi1>, vector<2x128xf32>
    %c6 = arith.constant 6 : index
    %c0_25 = arith.constant 0 : index
    %89 = vector.load %arg12[%c6, %c0_25] : memref<16x512xf32, #tpu.memory_space<vmem>>, vector<2x512xf32>
    %cst_26 = arith.constant dense<0.000000e+00> : vector<2x512xf32>
    %90 = tpu.matmul %88, %7, %cst_26 {dimension_numbers = #tpu.dot_dimension_numbers<[1], [0], [0], [1], [0, 0, 1, 1], [], []>} : vector<2x128xf32>, vector<128x512xf32>, vector<2x512xf32> -> vector<2x512xf32>
    %91 = arith.addf %89, %90 : vector<2x512xf32>
    %92 = vector.extract_strided_slice %91 {offsets = [0, 0], sizes = [2, 384], strides = [1, 1]} : vector<2x512xf32> to vector<2x384xf32>
    %93 = arith.negf %92 : vector<2x384xf32>
    %94 = math.exp %93 : vector<2x384xf32>
    %cst_27 = arith.constant 1.000000e+00 : f32
    %95 = vector.broadcast %cst_27 : f32 to vector<2x384xf32>
    %96 = arith.addf %95, %94 : vector<2x384xf32>
    %97 = arith.divf %95, %96 : vector<2x384xf32>
    %98 = vector.extract_strided_slice %97 {offsets = [0, 0], sizes = [2, 128], strides = [1, 1]} : vector<2x384xf32> to vector<2x128xf32>
    %99 = vector.extract_strided_slice %97 {offsets = [0, 128], sizes = [2, 128], strides = [1, 1]} : vector<2x384xf32> to vector<2x128xf32>
    %100 = vector.extract_strided_slice %97 {offsets = [0, 256], sizes = [2, 128], strides = [1, 1]} : vector<2x384xf32> to vector<2x128xf32>
    %101 = vector.extract_strided_slice %91 {offsets = [0, 384], sizes = [2, 128], strides = [1, 1]} : vector<2x512xf32> to vector<2x128xf32>
    %102 = math.tanh %101 : vector<2x128xf32>
    %103 = arith.mulf %99, %87 : vector<2x128xf32>
    %104 = arith.mulf %98, %102 : vector<2x128xf32>
    %105 = arith.addf %103, %104 : vector<2x128xf32>
    %106 = math.tanh %105 : vector<2x128xf32>
    %107 = arith.mulf %100, %106 : vector<2x128xf32>
    %c0_28 = arith.constant 0 : index
    %c0_29 = arith.constant 0 : index
    %108 = vector.load %arg13[%c0_28, %c0_29] : memref<16x128xf32, #tpu.memory_space<vmem>>, vector<2x128xf32>
    tpu.vector_store %arg13[%c0_28, %c0_29], %107 {strides = array<i32>} : memref<16x128xf32, #tpu.memory_space<vmem>>, vector<2x128xf32>,
    %c8 = arith.constant 8 : index
    %c0_30 = arith.constant 0 : index
    %109 = vector.load %arg12[%c8, %c0_30] : memref<16x512xf32, #tpu.memory_space<vmem>>, vector<2x512xf32>
    %cst_31 = arith.constant dense<0.000000e+00> : vector<2x512xf32>
    %110 = tpu.matmul %107, %7, %cst_31 {dimension_numbers = #tpu.dot_dimension_numbers<[1], [0], [0], [1], [0, 0, 1, 1], [], []>} : vector<2x128xf32>, vector<128x512xf32>, vector<2x512xf32> -> vector<2x512xf32>
    %111 = arith.addf %109, %110 : vector<2x512xf32>
    %112 = vector.extract_strided_slice %111 {offsets = [0, 0], sizes = [2, 384], strides = [1, 1]} : vector<2x512xf32> to vector<2x384xf32>
    %113 = arith.negf %112 : vector<2x384xf32>
    %114 = math.exp %113 : vector<2x384xf32>
    %cst_32 = arith.constant 1.000000e+00 : f32
    %115 = vector.broadcast %cst_32 : f32 to vector<2x384xf32>
    %116 = arith.addf %115, %114 : vector<2x384xf32>
    %117 = arith.divf %115, %116 : vector<2x384xf32>
    %118 = vector.extract_strided_slice %117 {offsets = [0, 0], sizes = [2, 128], strides = [1, 1]} : vector<2x384xf32> to vector<2x128xf32>
    %119 = vector.extract_strided_slice %117 {offsets = [0, 128], sizes = [2, 128], strides = [1, 1]} : vector<2x384xf32> to vector<2x128xf32>
    %120 = vector.extract_strided_slice %117 {offsets = [0, 256], sizes = [2, 128], strides = [1, 1]} : vector<2x384xf32> to vector<2x128xf32>
    %121 = vector.extract_strided_slice %111 {offsets = [0, 384], sizes = [2, 128], strides = [1, 1]} : vector<2x512xf32> to vector<2x128xf32>
    %122 = math.tanh %121 : vector<2x128xf32>
    %123 = arith.mulf %119, %105 : vector<2x128xf32>
    %124 = arith.mulf %118, %122 : vector<2x128xf32>
    %125 = arith.addf %123, %124 : vector<2x128xf32>
    %126 = math.tanh %125 : vector<2x128xf32>
    %127 = arith.mulf %120, %126 : vector<2x128xf32>
    %c2_33 = arith.constant 2 : index
    %c0_34 = arith.constant 0 : index
    %128 = vector.load %arg13[%c2_33, %c0_34] : memref<16x128xf32, #tpu.memory_space<vmem>>, vector<2x128xf32>
    tpu.vector_store %arg13[%c2_33, %c0_34], %127 {strides = array<i32>} : memref<16x128xf32, #tpu.memory_space<vmem>>, vector<2x128xf32>,
    %c10 = arith.constant 10 : index
    %c0_35 = arith.constant 0 : index
    %129 = vector.load %arg12[%c10, %c0_35] : memref<16x512xf32, #tpu.memory_space<vmem>>, vector<2x512xf32>
    %cst_36 = arith.constant dense<0.000000e+00> : vector<2x512xf32>
    %130 = tpu.matmul %127, %7, %cst_36 {dimension_numbers = #tpu.dot_dimension_numbers<[1], [0], [0], [1], [0, 0, 1, 1], [], []>} : vector<2x128xf32>, vector<128x512xf32>, vector<2x512xf32> -> vector<2x512xf32>
    %131 = arith.addf %129, %130 : vector<2x512xf32>
    %132 = vector.extract_strided_slice %131 {offsets = [0, 0], sizes = [2, 384], strides = [1, 1]} : vector<2x512xf32> to vector<2x384xf32>
    %133 = arith.negf %132 : vector<2x384xf32>
    %134 = math.exp %133 : vector<2x384xf32>
    %cst_37 = arith.constant 1.000000e+00 : f32
    %135 = vector.broadcast %cst_37 : f32 to vector<2x384xf32>
    %136 = arith.addf %135, %134 : vector<2x384xf32>
    %137 = arith.divf %135, %136 : vector<2x384xf32>
    %138 = vector.extract_strided_slice %137 {offsets = [0, 0], sizes = [2, 128], strides = [1, 1]} : vector<2x384xf32> to vector<2x128xf32>
    %139 = vector.extract_strided_slice %137 {offsets = [0, 128], sizes = [2, 128], strides = [1, 1]} : vector<2x384xf32> to vector<2x128xf32>
    %140 = vector.extract_strided_slice %137 {offsets = [0, 256], sizes = [2, 128], strides = [1, 1]} : vector<2x384xf32> to vector<2x128xf32>
    %141 = vector.extract_strided_slice %131 {offsets = [0, 384], sizes = [2, 128], strides = [1, 1]} : vector<2x512xf32> to vector<2x128xf32>
    %142 = math.tanh %141 : vector<2x128xf32>
    %143 = arith.mulf %139, %125 : vector<2x128xf32>
    %144 = arith.mulf %138, %142 : vector<2x128xf32>
    %145 = arith.addf %143, %144 : vector<2x128xf32>
    %146 = math.tanh %145 : vector<2x128xf32>
    %147 = arith.mulf %140, %146 : vector<2x128xf32>
    %c4_38 = arith.constant 4 : index
    %c0_39 = arith.constant 0 : index
    %148 = vector.load %arg13[%c4_38, %c0_39] : memref<16x128xf32, #tpu.memory_space<vmem>>, vector<2x128xf32>
    tpu.vector_store %arg13[%c4_38, %c0_39], %147 {strides = array<i32>} : memref<16x128xf32, #tpu.memory_space<vmem>>, vector<2x128xf32>,
    %c12 = arith.constant 12 : index
    %c0_40 = arith.constant 0 : index
    %149 = vector.load %arg12[%c12, %c0_40] : memref<16x512xf32, #tpu.memory_space<vmem>>, vector<2x512xf32>
    %cst_41 = arith.constant dense<0.000000e+00> : vector<2x512xf32>
    %150 = tpu.matmul %147, %7, %cst_41 {dimension_numbers = #tpu.dot_dimension_numbers<[1], [0], [0], [1], [0, 0, 1, 1], [], []>} : vector<2x128xf32>, vector<128x512xf32>, vector<2x512xf32> -> vector<2x512xf32>
    %151 = arith.addf %149, %150 : vector<2x512xf32>
    %152 = vector.extract_strided_slice %151 {offsets = [0, 0], sizes = [2, 384], strides = [1, 1]} : vector<2x512xf32> to vector<2x384xf32>
    %153 = arith.negf %152 : vector<2x384xf32>
    %154 = math.exp %153 : vector<2x384xf32>
    %cst_42 = arith.constant 1.000000e+00 : f32
    %155 = vector.broadcast %cst_42 : f32 to vector<2x384xf32>
    %156 = arith.addf %155, %154 : vector<2x384xf32>
    %157 = arith.divf %155, %156 : vector<2x384xf32>
    %158 = vector.extract_strided_slice %157 {offsets = [0, 0], sizes = [2, 128], strides = [1, 1]} : vector<2x384xf32> to vector<2x128xf32>
    %159 = vector.extract_strided_slice %157 {offsets = [0, 128], sizes = [2, 128], strides = [1, 1]} : vector<2x384xf32> to vector<2x128xf32>
    %160 = vector.extract_strided_slice %157 {offsets = [0, 256], sizes = [2, 128], strides = [1, 1]} : vector<2x384xf32> to vector<2x128xf32>
    %161 = vector.extract_strided_slice %151 {offsets = [0, 384], sizes = [2, 128], strides = [1, 1]} : vector<2x512xf32> to vector<2x128xf32>
    %162 = math.tanh %161 : vector<2x128xf32>
    %163 = arith.mulf %159, %145 : vector<2x128xf32>
    %164 = arith.mulf %158, %162 : vector<2x128xf32>
    %165 = arith.addf %163, %164 : vector<2x128xf32>
    %166 = math.tanh %165 : vector<2x128xf32>
    %167 = arith.mulf %160, %166 : vector<2x128xf32>
    %c6_43 = arith.constant 6 : index
    %c0_44 = arith.constant 0 : index
    %168 = vector.load %arg13[%c6_43, %c0_44] : memref<16x128xf32, #tpu.memory_space<vmem>>, vector<2x128xf32>
    tpu.vector_store %arg13[%c6_43, %c0_44], %167 {strides = array<i32>} : memref<16x128xf32, #tpu.memory_space<vmem>>, vector<2x128xf32>,
    %c14 = arith.constant 14 : index
    %c0_45 = arith.constant 0 : index
    %169 = vector.load %arg12[%c14, %c0_45] : memref<16x512xf32, #tpu.memory_space<vmem>>, vector<2x512xf32>
    %cst_46 = arith.constant dense<0.000000e+00> : vector<2x512xf32>
    %170 = tpu.matmul %167, %7, %cst_46 {dimension_numbers = #tpu.dot_dimension_numbers<[1], [0], [0], [1], [0, 0, 1, 1], [], []>} : vector<2x128xf32>, vector<128x512xf32>, vector<2x512xf32> -> vector<2x512xf32>
    %171 = arith.addf %169, %170 : vector<2x512xf32>
    %172 = vector.extract_strided_slice %171 {offsets = [0, 0], sizes = [2, 384], strides = [1, 1]} : vector<2x512xf32> to vector<2x384xf32>
    %173 = arith.negf %172 : vector<2x384xf32>
    %174 = math.exp %173 : vector<2x384xf32>
    %cst_47 = arith.constant 1.000000e+00 : f32
    %175 = vector.broadcast %cst_47 : f32 to vector<2x384xf32>
    %176 = arith.addf %175, %174 : vector<2x384xf32>
    %177 = arith.divf %175, %176 : vector<2x384xf32>
    %178 = vector.extract_strided_slice %177 {offsets = [0, 0], sizes = [2, 128], strides = [1, 1]} : vector<2x384xf32> to vector<2x128xf32>
    %179 = vector.extract_strided_slice %177 {offsets = [0, 128], sizes = [2, 128], strides = [1, 1]} : vector<2x384xf32> to vector<2x128xf32>
    %180 = vector.extract_strided_slice %177 {offsets = [0, 256], sizes = [2, 128], strides = [1, 1]} : vector<2x384xf32> to vector<2x128xf32>
    %181 = vector.extract_strided_slice %171 {offsets = [0, 384], sizes = [2, 128], strides = [1, 1]} : vector<2x512xf32> to vector<2x128xf32>
    %182 = math.tanh %181 : vector<2x128xf32>
    %183 = arith.mulf %179, %165 : vector<2x128xf32>
    %184 = arith.mulf %178, %182 : vector<2x128xf32>
    %185 = arith.addf %183, %184 : vector<2x128xf32>
    %186 = math.tanh %185 : vector<2x128xf32>
    %187 = arith.mulf %180, %186 : vector<2x128xf32>
    %c8_48 = arith.constant 8 : index
    %c0_49 = arith.constant 0 : index
    %188 = vector.load %arg13[%c8_48, %c0_49] : memref<16x128xf32, #tpu.memory_space<vmem>>, vector<2x128xf32>
    tpu.vector_store %arg13[%c8_48, %c0_49], %187 {strides = array<i32>} : memref<16x128xf32, #tpu.memory_space<vmem>>, vector<2x128xf32>,
    %c14_50 = arith.constant 14 : index
    %c0_51 = arith.constant 0 : index
    %189 = vector.load %arg12[%c14_50, %c0_51] : memref<16x512xf32, #tpu.memory_space<vmem>>, vector<2x512xf32>
    %cst_52 = arith.constant dense<0.000000e+00> : vector<2x512xf32>
    %190 = tpu.matmul %187, %7, %cst_52 {dimension_numbers = #tpu.dot_dimension_numbers<[1], [0], [0], [1], [0, 0, 1, 1], [], []>} : vector<2x128xf32>, vector<128x512xf32>, vector<2x512xf32> -> vector<2x512xf32>
    %191 = arith.addf %189, %190 : vector<2x512xf32>
    %192 = vector.extract_strided_slice %191 {offsets = [0, 0], sizes = [2, 384], strides = [1, 1]} : vector<2x512xf32> to vector<2x384xf32>
    %193 = arith.negf %192 : vector<2x384xf32>
    %194 = math.exp %193 : vector<2x384xf32>
    %cst_53 = arith.constant 1.000000e+00 : f32
    %195 = vector.broadcast %cst_53 : f32 to vector<2x384xf32>
    %196 = arith.addf %195, %194 : vector<2x384xf32>
    %197 = arith.divf %195, %196 : vector<2x384xf32>
    %198 = vector.extract_strided_slice %197 {offsets = [0, 0], sizes = [2, 128], strides = [1, 1]} : vector<2x384xf32> to vector<2x128xf32>
    %199 = vector.extract_strided_slice %197 {offsets = [0, 128], sizes = [2, 128], strides = [1, 1]} : vector<2x384xf32> to vector<2x128xf32>
    %200 = vector.extract_strided_slice %197 {offsets = [0, 256], sizes = [2, 128], strides = [1, 1]} : vector<2x384xf32> to vector<2x128xf32>
    %201 = vector.extract_strided_slice %191 {offsets = [0, 384], sizes = [2, 128], strides = [1, 1]} : vector<2x512xf32> to vector<2x128xf32>
    %202 = math.tanh %201 : vector<2x128xf32>
    %203 = arith.mulf %199, %185 : vector<2x128xf32>
    %204 = arith.mulf %198, %202 : vector<2x128xf32>
    %205 = arith.addf %203, %204 : vector<2x128xf32>
    %206 = math.tanh %205 : vector<2x128xf32>
    %207 = arith.mulf %200, %206 : vector<2x128xf32>
    %c32_i32_54 = arith.constant 32 : i32
    %208 = vector.broadcast %c32_i32_54 : i32 to vector<2x128xi32>
    %209 = arith.cmpi sge, %10, %208 : vector<2x128xi32>
    %c128_i32 = arith.constant 128 : i32
    %210 = vector.broadcast %c128_i32 : i32 to vector<2x128xi32>
    %211 = arith.cmpi slt, %10, %210 : vector<2x128xi32>
    %212 = arith.andi %209, %211 : vector<2x128xi1>
    %213 = arith.select %212, %205, %185 : vector<2x128xi1>, vector<2x128xf32>
    %214 = arith.select %212, %207, %187 : vector<2x128xi1>, vector<2x128xf32>
    %c10_55 = arith.constant 10 : index
    %c0_56 = arith.constant 0 : index
    %215 = vector.load %arg13[%c10_55, %c0_56] : memref<16x128xf32, #tpu.memory_space<vmem>>, vector<2x128xf32>
    tpu.vector_store %arg13[%c10_55, %c0_56], %214 {strides = array<i32>} : memref<16x128xf32, #tpu.memory_space<vmem>>, vector<2x128xf32>,
    %c14_57 = arith.constant 14 : index
    %c0_58 = arith.constant 0 : index
    %216 = vector.load %arg12[%c14_57, %c0_58] : memref<16x512xf32, #tpu.memory_space<vmem>>, vector<2x512xf32>
    %cst_59 = arith.constant dense<0.000000e+00> : vector<2x512xf32>
    %217 = tpu.matmul %214, %7, %cst_59 {dimension_numbers = #tpu.dot_dimension_numbers<[1], [0], [0], [1], [0, 0, 1, 1], [], []>} : vector<2x128xf32>, vector<128x512xf32>, vector<2x512xf32> -> vector<2x512xf32>
    %218 = arith.addf %216, %217 : vector<2x512xf32>
    %219 = vector.extract_strided_slice %218 {offsets = [0, 0], sizes = [2, 384], strides = [1, 1]} : vector<2x512xf32> to vector<2x384xf32>
    %220 = arith.negf %219 : vector<2x384xf32>
    %221 = math.exp %220 : vector<2x384xf32>
    %cst_60 = arith.constant 1.000000e+00 : f32
    %222 = vector.broadcast %cst_60 : f32 to vector<2x384xf32>
    %223 = arith.addf %222, %221 : vector<2x384xf32>
    %224 = arith.divf %222, %223 : vector<2x384xf32>
    %225 = vector.extract_strided_slice %224 {offsets = [0, 0], sizes = [2, 128], strides = [1, 1]} : vector<2x384xf32> to vector<2x128xf32>
    %226 = vector.extract_strided_slice %224 {offsets = [0, 128], sizes = [2, 128], strides = [1, 1]} : vector<2x384xf32> to vector<2x128xf32>
    %227 = vector.extract_strided_slice %224 {offsets = [0, 256], sizes = [2, 128], strides = [1, 1]} : vector<2x384xf32> to vector<2x128xf32>
    %228 = vector.extract_strided_slice %218 {offsets = [0, 384], sizes = [2, 128], strides = [1, 1]} : vector<2x512xf32> to vector<2x128xf32>
    %229 = math.tanh %228 : vector<2x128xf32>
    %230 = arith.mulf %226, %213 : vector<2x128xf32>
    %231 = arith.mulf %225, %229 : vector<2x128xf32>
    %232 = arith.addf %230, %231 : vector<2x128xf32>
    %233 = math.tanh %232 : vector<2x128xf32>
    %234 = arith.mulf %227, %233 : vector<2x128xf32>
    %c64_i32_61 = arith.constant 64 : i32
    %235 = vector.broadcast %c64_i32_61 : i32 to vector<2x128xi32>
    %236 = arith.cmpi sge, %10, %235 : vector<2x128xi32>
    %c128_i32_62 = arith.constant 128 : i32
    %237 = vector.broadcast %c128_i32_62 : i32 to vector<2x128xi32>
    %238 = arith.cmpi slt, %10, %237 : vector<2x128xi32>
    %239 = arith.andi %236, %238 : vector<2x128xi1>
    %240 = arith.select %239, %232, %213 : vector<2x128xi1>, vector<2x128xf32>
    %241 = arith.select %239, %234, %214 : vector<2x128xi1>, vector<2x128xf32>
    %c12_63 = arith.constant 12 : index
    %c0_64 = arith.constant 0 : index
    %242 = vector.load %arg13[%c12_63, %c0_64] : memref<16x128xf32, #tpu.memory_space<vmem>>, vector<2x128xf32>
    tpu.vector_store %arg13[%c12_63, %c0_64], %241 {strides = array<i32>} : memref<16x128xf32, #tpu.memory_space<vmem>>, vector<2x128xf32>,
    %c14_65 = arith.constant 14 : index
    %c0_66 = arith.constant 0 : index
    %243 = vector.load %arg12[%c14_65, %c0_66] : memref<16x512xf32, #tpu.memory_space<vmem>>, vector<2x512xf32>
    %cst_67 = arith.constant dense<0.000000e+00> : vector<2x512xf32>
    %244 = tpu.matmul %241, %7, %cst_67 {dimension_numbers = #tpu.dot_dimension_numbers<[1], [0], [0], [1], [0, 0, 1, 1], [], []>} : vector<2x128xf32>, vector<128x512xf32>, vector<2x512xf32> -> vector<2x512xf32>
    %245 = arith.addf %243, %244 : vector<2x512xf32>
    %246 = vector.extract_strided_slice %245 {offsets = [0, 0], sizes = [2, 384], strides = [1, 1]} : vector<2x512xf32> to vector<2x384xf32>
    %247 = arith.negf %246 : vector<2x384xf32>
    %248 = math.exp %247 : vector<2x384xf32>
    %cst_68 = arith.constant 1.000000e+00 : f32
    %249 = vector.broadcast %cst_68 : f32 to vector<2x384xf32>
    %250 = arith.addf %249, %248 : vector<2x384xf32>
    %251 = arith.divf %249, %250 : vector<2x384xf32>
    %252 = vector.extract_strided_slice %251 {offsets = [0, 0], sizes = [2, 128], strides = [1, 1]} : vector<2x384xf32> to vector<2x128xf32>
    %253 = vector.extract_strided_slice %251 {offsets = [0, 128], sizes = [2, 128], strides = [1, 1]} : vector<2x384xf32> to vector<2x128xf32>
    %254 = vector.extract_strided_slice %251 {offsets = [0, 256], sizes = [2, 128], strides = [1, 1]} : vector<2x384xf32> to vector<2x128xf32>
    %255 = vector.extract_strided_slice %245 {offsets = [0, 384], sizes = [2, 128], strides = [1, 1]} : vector<2x512xf32> to vector<2x128xf32>
    %256 = math.tanh %255 : vector<2x128xf32>
    %257 = arith.mulf %253, %240 : vector<2x128xf32>
    %258 = arith.mulf %252, %256 : vector<2x128xf32>
    %259 = arith.addf %257, %258 : vector<2x128xf32>
    %260 = math.tanh %259 : vector<2x128xf32>
    %261 = arith.mulf %254, %260 : vector<2x128xf32>
    %c96_i32_69 = arith.constant 96 : i32
    %262 = vector.broadcast %c96_i32_69 : i32 to vector<2x128xi32>
    %263 = arith.cmpi sge, %10, %262 : vector<2x128xi32>
    %c128_i32_70 = arith.constant 128 : i32
    %264 = vector.broadcast %c128_i32_70 : i32 to vector<2x128xi32>
    %265 = arith.cmpi slt, %10, %264 : vector<2x128xi32>
    %266 = arith.andi %263, %265 : vector<2x128xi1>
    %267 = arith.select %266, %259, %240 : vector<2x128xi1>, vector<2x128xf32>
    %268 = arith.select %266, %261, %241 : vector<2x128xi1>, vector<2x128xf32>
    %c14_71 = arith.constant 14 : index
    %c0_72 = arith.constant 0 : index
    %269 = vector.load %arg13[%c14_71, %c0_72] : memref<16x128xf32, #tpu.memory_space<vmem>>, vector<2x128xf32>
    tpu.vector_store %arg13[%c14_71, %c0_72], %268 {strides = array<i32>} : memref<16x128xf32, #tpu.memory_space<vmem>>, vector<2x128xf32>,
    %c0_73 = arith.constant 0 : index
    %c0_74 = arith.constant 0 : index
    %270 = vector.load %arg10[%c0_73, %c0_74] : memref<2x128xf32, #tpu.memory_space<vmem>>, vector<2x128xf32>
    tpu.vector_store %arg10[%c0_73, %c0_74], %268 {strides = array<i32>} : memref<2x128xf32, #tpu.memory_space<vmem>>, vector<2x128xf32>,
    %c0_75 = arith.constant 0 : index
    %c0_76 = arith.constant 0 : index
    %271 = vector.load %arg11[%c0_75, %c0_76] : memref<2x128xf32, #tpu.memory_space<vmem>>, vector<2x128xf32>
    tpu.vector_store %arg11[%c0_75, %c0_76], %267 {strides = array<i32>} : memref<2x128xf32, #tpu.memory_space<vmem>>, vector<2x128xf32>,
    %c0_77 = arith.constant 0 : index
    %c0_78 = arith.constant 0 : index
    %272 = vector.load %arg13[%c0_77, %c0_78] : memref<16x128xf32, #tpu.memory_space<vmem>>, vector<16x128xf32>
    %c0_79 = arith.constant 0 : index
    %c0_80 = arith.constant 0 : index
    %273 = vector.load %arg7[%c0_79, %c0_80] : memref<128x128xf32, #tpu.memory_space<vmem>>, vector<128x128xf32>
    %cst_81 = arith.constant dense<0.000000e+00> : vector<16x128xf32>
    %274 = tpu.matmul %272, %273, %cst_81 {dimension_numbers = #tpu.dot_dimension_numbers<[1], [0], [0], [1], [0, 0, 1, 1], [], []>} : vector<16x128xf32>, vector<128x128xf32>, vector<16x128xf32> -> vector<16x128xf32>
    %c0_82 = arith.constant 0 : index
    %c0_83 = arith.constant 0 : index
    %275 = vector.load %arg8[%c0_82, %c0_83] : memref<1x128xf32, #tpu.memory_space<vmem>>, vector<1x128xf32>
    %276 = vector.broadcast %275 : vector<1x128xf32> to vector<16x128xf32>
    %277 = arith.addf %274, %276 : vector<16x128xf32>
    %278 = arith.negf %277 : vector<16x128xf32>
    %279 = math.exp %278 : vector<16x128xf32>
    %cst_84 = arith.constant 1.000000e+00 : f32
    %280 = vector.broadcast %cst_84 : f32 to vector<16x128xf32>
    %281 = arith.addf %280, %279 : vector<16x128xf32>
    %282 = arith.divf %280, %281 : vector<16x128xf32>
    %c0_85 = arith.constant 0 : index
    %c0_86 = arith.constant 0 : index
    %283 = vector.load %arg9[%c0_85, %c0_86] : memref<16x128xf32, #tpu.memory_space<vmem>>, vector<16x128xf32>
    tpu.vector_store %arg9[%c0_85, %c0_86], %282 {strides = array<i32>} : memref<16x128xf32, #tpu.memory_space<vmem>>, vector<16x128xf32>,
    return
  }
  func.func @transform_0(%arg0: i32) -> (i32, i32) {
    %c0_i32 = arith.constant 0 : i32
    %c0_i32_0 = arith.constant 0 : i32
    %c0_i32_1 = arith.constant 0 : i32
    return %c0_i32, %c0_i32_0 : i32, i32
  }
  func.func @transform_1(%arg0: i32) -> (i32, i32) {
    %c0_i32 = arith.constant 0 : i32
    %c0_i32_0 = arith.constant 0 : i32
    %c0_i32_1 = arith.constant 0 : i32
    return %c0_i32, %c0_i32_0 : i32, i32
  }
  func.func @transform_2(%arg0: i32) -> (i32, i32) {
    %c0_i32 = arith.constant 0 : i32
    %c0_i32_0 = arith.constant 0 : i32
    %c0_i32_1 = arith.constant 0 : i32
    return %c0_i32, %c0_i32_0 : i32, i32
  }
  func.func @transform_3(%arg0: i32) -> (i32, i32) {
    %c0_i32 = arith.constant 0 : i32
    %c0_i32_0 = arith.constant 0 : i32
    %c0_i32_1 = arith.constant 0 : i32
    return %c0_i32, %c0_i32_0 : i32, i32
  }
  func.func @transform_4(%arg0: i32) -> (i32, i32) {
    %c0_i32 = arith.constant 0 : i32
    %c0_i32_0 = arith.constant 0 : i32
    %c0_i32_1 = arith.constant 0 : i32
    return %c0_i32, %c0_i32_0 : i32, i32
  }
  func.func @transform_5(%arg0: i32) -> (i32, i32) {
    %c0_i32 = arith.constant 0 : i32
    %c0_i32_0 = arith.constant 0 : i32
    %c0_i32_1 = arith.constant 0 : i32
    return %c0_i32, %c0_i32_0 : i32, i32
  }
  func.func @transform_6(%arg0: i32) -> (i32, i32) {
    %c0_i32 = arith.constant 0 : i32
    %c0_i32_0 = arith.constant 0 : i32
    %c0_i32_1 = arith.constant 0 : i32
    return %c0_i32, %c0_i32_0 : i32, i32
  }
  func.func @transform_7(%arg0: i32) -> (i32, i32) {
    %c0_i32 = arith.constant 0 : i32
    %c0_i32_0 = arith.constant 0 : i32
    %c0_i32_1 = arith.constant 0 : i32
    return %c0_i32, %c0_i32_0 : i32, i32
  }
  func.func @transform_8(%arg0: i32) -> (i32, i32) {
    %c0_i32 = arith.constant 0 : i32
    %c0_i32_0 = arith.constant 0 : i32
    %c0_i32_1 = arith.constant 0 : i32
    return %c0_i32, %c0_i32_0 : i32, i32
  }
  func.func @transform_9(%arg0: i32) -> (i32, i32) {
    %c0_i32 = arith.constant 0 : i32
    %c0_i32_0 = arith.constant 0 : i32
    %c0_i32_1 = arith.constant 0 : i32
    return %c0_i32, %c0_i32_0 : i32, i32
  }
  func.func @transform_10(%arg0: i32) -> (i32, i32) {
    %c0_i32 = arith.constant 0 : i32
    %c0_i32_0 = arith.constant 0 : i32
    %c0_i32_1 = arith.constant 0 : i32
    return %c0_i32, %c0_i32_0 : i32, i32
  }
}

</mosaic_0001>

<bundles_post_ra>
// kernel: tweet_decider_forward.1
= control target key start
LH: loop header
LB: loop body
LE: loop exit
PB: predicated region body
PF: predicated region fallthrough
CT: control target
= control target key end

     0   :  { %16 = vsyncpa [#allocation5], 0  ;;  %s3599_s13 = smov [#allocation4]   ;;  %s4293_s0 = inlined_call_operand.vmem [shape: f32[16,16], index: 0, kind: input, shape index: {}]   ;;  %s4294_s1 = inlined_call_operand.vmem [shape: f32[16,512], index: 1, kind: input, shape index: {}]   ;;  %s4295_s2 = inlined_call_operand.hbm [shape: f32[128,512], index: 2, kind: input, shape index: {}]   ;;  %s4296_s3 = inlined_call_operand.vmem [shape: f32[1,512], index: 3, kind: input, shape index: {}]   ;;  %s4297_s4 = inlined_call_operand.vmem [shape: f32[2,128], index: 4, kind: input, shape index: {}]   ;;  %s4298_s5 = inlined_call_operand.vmem [shape: f32[2,128], index: 5, kind: input, shape index: {}]   ;;  %s4299_s6 = inlined_call_operand.vmem [shape: f32[128,128], index: 6, kind: input, shape index: {}]   ;;  %s4300_s7 = inlined_call_operand.vmem [shape: f32[1,128], index: 7, kind: input, shape index: {}]   ;;  %s4301_s8 = inlined_call_operand.vmem [shape: f32[16,128], index: 8, kind: output, shape index: {0}]   ;;  %s4302_s9 = inlined_call_operand.vmem [shape: f32[2,128], index: 9, kind: output, shape index: {1}]   ;;  %s4303_s10 = inlined_call_operand.vmem [shape: f32[2,128], index: 10, kind: output, shape index: {2}]  }
   0x1   :  { %s26_s14 = sshll.u32 %s3599_s13, 4  ;;  %s3575_s17 = scalar_lea.hbm %s4295_s2, 8192  ;;  %s27_s14 = int_to_ptr.vmem [resolvable:$true] %s26_s14 }
   0x2   :  { %p3576_p0 = scmp.ne.s32.totalorder %s4295_s2, %s3575_s17  ;;  %p3579_p1 = scmp.lt.u32.totalorder %s3575_s17, %s4295_s2 }
   0x4   :  { %p3581_p2 = pnand %p3579_p1, %p3576_p0 }
   0x6   :  { %3584 = shalt.err (!%p3581_p2)
}
   0x7   :  { %s3585_s22 = scalar_lea.vmem %s27_s14, 8192  ;;  %p3590_p4 = scmp.lt.s32.totalorder %s27_s14, %s27_s14 }
   0x8   :  { %p3586_p3 = scmp.ne.s32.totalorder %s27_s14, %s3585_s22  ;;  %p3591_p5 = scmp.lt.s32.totalorder %s3585_s22, %s3585_s22 }
   0xa   :  { %p3592_p6 = por %p3591_p5, %p3590_p4 }
   0xc   :  { %p3593_p7 = pnand %p3592_p6, %p3586_p3 }
   0xe   :  { %3596 = shalt.err (!%p3593_p7)
}
   0xf   :  { %s3600_s23 = smov 512   ;;  %s3601_s24 = smov 32  }
  0x10   :  { %32 = dma.hbm_to_vmem [thread:$0]  %s4295_s2, 8192, %s27_s14, [#allocation5], %s3600_s23, %s3600_s23, %s3601_s24  }
  0x11   :  { %3597 = dma.done.wait [#allocation5], 8192  }
  0x12   :  { %3598 = vsyncadd [#allocation5], 4294959104  ;;  %v3602_v0 = vmov 0.0   ;;  %v49_v1 = vld [vmem:[%s4294_s1 + $0x8] sm:$0xff]  ;;  %v248_v3 = vld [vmem:[#allocation4 + $0x8] sm:$0xff]  ;;  %vm78_vm0 = vcmask 130048  }
  0x13   :  { %149 = vmatprep.mubr.f32.mxu1 %v3602_v0  ;;  %383 = vmatprep.mubr.f32.mxu0 %v3602_v0  ;;  %v53_v2 = vld [vmem:[%s4294_s1 + $0x28] sm:$0xff]  ;;  %v252_v5 = vld [vmem:[#allocation4 + $0x28] sm:$0xff]  ;;  %v48_v6 = vld [vmem:[%s4294_s1] sm:$0xff] }
  0x14   :  { %v2643_v4 = vpack.c.bf16 %v53_v2, %v49_v1  ;;  %v52_v7 = vld [vmem:[%s4294_s1 + $0x20] sm:$0xff]  ;;  %v3684_v8 = vpack.c.bf16 %v252_v5, %v248_v3  ;;  %v247_v10 = vld [vmem:[#allocation4] sm:$0xff]  ;;  %v256_v14 = vld [vmem:[#allocation4 + $0x48] sm:$0xff] }
  0x15   :  { %v2645_v9 = vpack.c.bf16 %v52_v7, %v48_v6  ;;  %v251_v11 = vld [vmem:[#allocation4 + $0x20] sm:$0xff]  ;;  %v46_v12 = vld [vmem:[%s4293_s0] sm:$0xff]  ;;  %v260_v15 = vld [vmem:[#allocation4 + $0x68] sm:$0xff] }
  0x16   :  { %2644 = vmatprep.subr.bf16.mxu1 %v2643_v4  ;;  %v3689_v13 = vpack.c.bf16 %v251_v11, %v247_v10  ;;  %v255_v16 = vld [vmem:[#allocation4 + $0x40] sm:$0xff]  ;;  %2652 = vmatprep.subr.bf16.mxu0 %v3684_v8  ;;  %v3692_v17 = vpack.c.bf16 %v260_v15, %v256_v14  ;;  %v51_v19 = vld [vmem:[%s4294_s1 + $0x18] sm:$0xff]  ;;  %v250_v31 = vld [vmem:[#allocation4 + $0x18] sm:$0xff] }
  0x17   :  { %2646 = vmatpush1.bf16.msra.mxu1 %v2645_v9  ;;  %v259_v18 = vld [vmem:[#allocation4 + $0x60] sm:$0xff]  ;;  %v55_v20 = vld [vmem:[%s4294_s1 + $0x38] sm:$0xff]  ;;  %v254_v32 = vld [vmem:[#allocation4 + $0x38] sm:$0xff] }
  0x18   :  { %2654 = vmatpush1.bf16.msra.mxu0 %v3689_v13  ;;  %v3701_v21 = vpack.c.bf16 %v259_v18, %v255_v16  ;;  %v2647_v22 = vpack.c.bf16 %v55_v20, %v51_v19  ;;  %v50_v23 = vld [vmem:[%s4294_s1 + $0x10] sm:$0xff]  ;;  %v264_v26 = vld [vmem:[#allocation4 + $0x88] sm:$0xff]  ;;  %v47_v33 = vld [vmem:[%s4293_s0 + $0x8] sm:$0xff]  ;;  %v3717_v34 = vpack.c.bf16 %v254_v32, %v250_v31 }
  0x19   :  { %v54_v24 = vld [vmem:[%s4294_s1 + $0x30] sm:$0xff]  ;;  %2656 = vmatprep.subr.bf16.mxu0 %v3692_v17  ;;  %v268_v27 = vld [vmem:[#allocation4 + $0xa8] sm:$0xff]  ;;  %v249_v38 = vld [vmem:[#allocation4 + $0x10] sm:$0xff] }
  0x1a   :  { %v2649_v25 = vpack.c.bf16 %v54_v24, %v50_v23  ;;  %v263_v28 = vld [vmem:[#allocation4 + $0x80] sm:$0xff]  ;;  %2550 = vmatmul.mubr.msk.f32.vlgmr.msra.gmra.mrb[0].mxu1 %vm78_vm0, %v46_v12  ;;  %2648 = vmatprep.subr.bf16.mxu1 %v2647_v22  ;;  %v3711_v29 = vpack.c.bf16 %v268_v27, %v264_v26  ;;  %v272_v35 = vld [vmem:[#allocation4 + $0xc8] sm:$0xff]  ;;  %v253_v39 = vld [vmem:[#allocation4 + $0x30] sm:$0xff] }
  0x1b   :  { %v267_v30 = vld [vmem:[#allocation4 + $0xa0] sm:$0xff]  ;;  %155 = vmatprep.mubr.f32.mxu1 %v3602_v0  ;;  %v276_v36 = vld [vmem:[#allocation4 + $0xe8] sm:$0xff]  ;;  %v258_v43 = vld [vmem:[#allocation4 + $0x58] sm:$0xff]  ;;  %v3728_v47 = vpack.c.bf16 %v253_v39, %v249_v38 }
  0x1c   :  { %2650 = vmatpush1.bf16.msra.mxu1 %v2649_v25  ;;  %2658 = vmatpush1.bf16.msra.mxu0 %v3701_v21  ;;  %v3720_v37 = vpack.c.bf16 %v267_v30, %v263_v28  ;;  %v271_v40 = vld [vmem:[#allocation4 + $0xc0] sm:$0xff]  ;;  %v3724_v41 = vpack.c.bf16 %v276_v36, %v272_v35  ;;  %v262_v44 = vld [vmem:[#allocation4 + $0x78] sm:$0xff]  ;;  %v280_v45 = vld [vmem:[#allocation4 + $0x108] sm:$0xff] }
  0x1d   :  { %2660 = vmatprep.subr.bf16.mxu0 %v3711_v29  ;;  %2684 = vmatprep.subr.bf16.mxu1 %v3717_v34  ;;  %v275_v42 = vld [vmem:[#allocation4 + $0xe0] sm:$0xff]  ;;  %v284_v46 = vld [vmem:[#allocation4 + $0x128] sm:$0xff]  ;;  %v3733_v49 = vpack.c.bf16 %v262_v44, %v258_v43  ;;  %v257_v50 = vld [vmem:[#allocation4 + $0x50] sm:$0xff] }
  0x1e   :  { %2551 = vmatmul.mubr.msk.f32.gmra.mrb[2].mxu1 %vm78_vm0, %v47_v33  ;;  %v3731_v48 = vpack.c.bf16 %v275_v42, %v271_v40  ;;  %v261_v51 = vld [vmem:[#allocation4 + $0x70] sm:$0xff]  ;;  %v279_v52 = vld [vmem:[#allocation4 + $0x100] sm:$0xff]  ;;  %v3736_v53 = vpack.c.bf16 %v284_v46, %v280_v45  ;;  %v266_v55 = vld [vmem:[#allocation4 + $0x98] sm:$0xff] }
  0x1f   :  { %226 = vmatprep.mubr.f32.mxu1 %v3602_v0  ;;  %v283_v54 = vld [vmem:[#allocation4 + $0x120] sm:$0xff]  ;;  %v270_v56 = vld [vmem:[#allocation4 + $0xb8] sm:$0xff]  ;;  %v288_v57 = vld [vmem:[#allocation4 + $0x148] sm:$0xff]  ;;  %v3740_v59 = vpack.c.bf16 %v261_v51, %v257_v50 }
  0x20   :  { %2662 = vmatpush1.bf16.msra.mxu0 %v3720_v37  ;;  %v292_v58 = vld [vmem:[#allocation4 + $0x168] sm:$0xff]  ;;  %v3745_v60 = vpack.c.bf16 %v283_v54, %v279_v52  ;;  %v3747_v61 = vpack.c.bf16 %v270_v56, %v266_v55  ;;  %v265_v62 = vld [vmem:[#allocation4 + $0x90] sm:$0xff]  ;;  %v287_v1 = vld [vmem:[#allocation4 + $0x140] sm:$0xff] }
  0x21   :  { %2664 = vmatprep.subr.bf16.mxu0 %v3724_v41  ;;  %v269_v63 = vld [vmem:[#allocation4 + $0xb0] sm:$0xff]  ;;  %v3750_v2 = vpack.c.bf16 %v292_v58, %v288_v57  ;;  %v291_v3 = vld [vmem:[#allocation4 + $0x160] sm:$0xff]  ;;  %v274_v4 = vld [vmem:[#allocation4 + $0xd8] sm:$0xff] }
  0x22   :  { %2552 = vmatmul.mubr.msk.f32.vlgmr.msra.gmra.mrb[4].mxu1 %vm78_vm0, %v46_v12  ;;  %v278_v5 = vld [vmem:[#allocation4 + $0xf8] sm:$0xff]  ;;  %v296_v6 = vld [vmem:[#allocation4 + $0x188] sm:$0xff]  ;;  %v3754_v9 = vpack.c.bf16 %v269_v63, %v265_v62  ;;  %v3759_v10 = vpack.c.bf16 %v291_v3, %v287_v1  ;;  %v273_v12 = vld [vmem:[#allocation4 + $0xd0] sm:$0xff]  ;;  %v58_v1 = vlaneseq }
  0x23   :  { %2686 = vmatpush1.bf16.msra.mxu1 %v3728_v47  ;;  %232 = vmatprep.mubr.f32.mxu1 %v3602_v0  ;;  %v300_v7 = vld [vmem:[#allocation4 + $0x1a8] sm:$0xff]  ;;  %v3761_v11 = vpack.c.bf16 %v278_v5, %v274_v4  ;;  %v277_v14 = vld [vmem:[#allocation4 + $0xf0] sm:$0xff]  ;;  %v295_v15 = vld [vmem:[#allocation4 + $0x180] sm:$0xff] }
  0x24   :  { %2666 = vmatpush1.bf16.msra.mxu0 %v3731_v48  ;;  %2688 = vmatprep.subr.bf16.mxu1 %v3733_v49  ;;  %v3764_v16 = vpack.c.bf16 %v300_v7, %v296_v6  ;;  %v299_v18 = vld [vmem:[#allocation4 + $0x1a0] sm:$0xff]  ;;  %v282_v19 = vld [vmem:[#allocation4 + $0x118] sm:$0xff]  ;;  %v304_v22 = vld [vmem:[#allocation4 + $0x1c8] sm:$0xff]  ;;  %v3767_v24 = vpack.c.bf16 %v277_v14, %v273_v12  ;;  %v59_v3 = vshrl.u32 %v58_v1, 7 }
  0x25   :  { %2668 = vmatprep.subr.bf16.mxu0 %v3736_v53  ;;  %v286_v20 = vld [vmem:[#allocation4 + $0x138] sm:$0xff]  ;;  %v308_v23 = vld [vmem:[#allocation4 + $0x1e8] sm:$0xff]  ;;  %v3771_v25 = vpack.c.bf16 %v299_v18, %v295_v15  ;;  %v281_v27 = vld [vmem:[#allocation4 + $0x110] sm:$0xff] }
  0x26   :  { %2553 = vmatmul.mubr.msk.f32.gmra.mrb[6].mxu1 %vm78_vm0, %v47_v33  ;;  %v3773_v26 = vpack.c.bf16 %v286_v20, %v282_v19  ;;  %v285_v28 = vld [vmem:[#allocation4 + $0x130] sm:$0xff]  ;;  %v303_v30 = vld [vmem:[#allocation4 + $0x1c0] sm:$0xff]  ;;  %v3776_v31 = vpack.c.bf16 %v308_v23, %v304_v22  ;;  %v290_v33 = vld [vmem:[#allocation4 + $0x158] sm:$0xff]  ;;  %v60_v4 = vsub.s32 0, %v59_v3  ;;  %v64_v6 = vsub.s32 1, %v59_v3 }
  0x27   :  { %2690 = vmatpush1.bf16.msra.mxu1 %v3740_v59  ;;  %454 = vmatprep.mubr.f32.mxu1 %v3602_v0  ;;  %v307_v32 = vld [vmem:[#allocation4 + $0x1e0] sm:$0xff]  ;;  %v294_v35 = vld [vmem:[#allocation4 + $0x178] sm:$0xff]  ;;  %v3779_v36 = vpack.c.bf16 %v285_v28, %v281_v27  ;;  %v289_v40 = vld [vmem:[#allocation4 + $0x150] sm:$0xff]  ;;  %v68_v19 = vsub.s32 2, %v59_v3  ;;  %v72_v22 = vsub.s32 3, %v59_v3 }
  0x28   :  { %2670 = vmatpush1.bf16.msra.mxu0 %v3745_v60  ;;  %2692 = vmatprep.subr.bf16.mxu1 %v3747_v61  ;;  %v3783_v38 = vpack.c.bf16 %v307_v32, %v303_v30  ;;  %v3785_v39 = vpack.c.bf16 %v294_v35, %v290_v33  ;;  %v293_v42 = vld [vmem:[#allocation4 + $0x170] sm:$0xff]  ;;  %v298_v43 = vld [vmem:[#allocation4 + $0x198] sm:$0xff] }
  0x29   :  { %2672 = vmatprep.subr.bf16.mxu0 %v3750_v2  ;;  %v302_v44 = vld [vmem:[#allocation4 + $0x1b8] sm:$0xff]  ;;  %v3789_v45 = vpack.c.bf16 %v293_v42, %v289_v40  ;;  %v3796_v46 = vld [vmem:[%s4297_s4] sm:$0x3] }
  0x2a   :  { %v3798_v50 = vpack.c.bf16 %v302_v44, %v298_v43  ;;  %v297_v51 = vld [vmem:[#allocation4 + $0x190] sm:$0xff]  ;;  %v306_v54 = vld [vmem:[#allocation4 + $0x1d8] sm:$0xff] }
  0x2b   :  { %2694 = vmatpush1.bf16.msra.mxu1 %v3754_v9  ;;  %v301_v52 = vld [vmem:[#allocation4 + $0x1b0] sm:$0xff]  ;;  %v310_v55 = vld [vmem:[#allocation4 + $0x1f8] sm:$0xff] }
  0x2c   :  { %2674 = vmatpush1.bf16.msra.mxu0 %v3759_v10  ;;  %2696 = vmatprep.subr.bf16.mxu1 %v3761_v11  ;;  %v3803_v56 = vpack.c.bf16 %v301_v52, %v297_v51  ;;  %v3806_v57 = vpack.c.bf16 %v310_v55, %v306_v54  ;;  %v305_v58 = vld [vmem:[#allocation4 + $0x1d0] sm:$0xff] }
  0x2d   :  { %2676 = vmatprep.subr.bf16.mxu0 %v3764_v16  ;;  %v309_v62 = vld [vmem:[#allocation4 + $0x1f0] sm:$0xff] }
  0x2e   :  { %v3812_v63 = vpack.c.bf16 %v309_v62, %v305_v58  ;;  %v56_v5 = vld [vmem:[%s4296_s3] sm:$0xf] }
  0x2f   :  { %2698 = vmatpush1.bf16.msra.mxu1 %v3767_v24  ;;  %v61_v7 = vrot.slane %v56_v5, %v60_v4  ;;  %v65_v12 = vrot.slane %v56_v5, %v64_v6  ;;  %v69_v30 = vrot.slane %v56_v5, %v68_v19  ;;  %v73_v33 = vrot.slane %v56_v5, %v72_v22 }
  0x30   :  { %2678 = vmatpush1.bf16.msra.mxu0 %v3771_v25  ;;  %2700 = vmatprep.subr.bf16.mxu1 %v3773_v26 }
  0x31   :  { %2680 = vmatprep.subr.bf16.mxu0 %v3776_v31 }
  0x33   :  { %2702 = vmatpush1.bf16.msra.mxu1 %v3779_v36 }
  0x34   :  { %2682 = vmatpush1.bf16.msra.mxu0 %v3783_v38  ;;  %2704 = vmatprep.subr.bf16.mxu1 %v3785_v39 }
  0x35   :  { %2716 = vmatprep.subr.bf16.mxu0 %v3684_v8 }
  0x37   :  { %384 = vmatmul.mubr.f32.vlgmr.msra.gmra.mrb[0].mxu0 %v3796_v46  ;;  %2706 = vmatpush1.bf16.msra.mxu1 %v3789_v45 }
  0x38   :  { %2708 = vmatprep.subr.bf16.mxu1 %v3798_v50  ;;  %2718 = vmatpush1.bf16.msra.mxu0 %v3689_v13 }
  0x39   :  { %2720 = vmatprep.subr.bf16.mxu0 %v3692_v17  ;;  %562 = vmatprep.mubr.f32.mxu0 %v3602_v0 }
  0x3b   :  { %2710 = vmatpush1.bf16.msra.mxu1 %v3803_v56 }
  0x3c   :  { %2712 = vmatprep.subr.bf16.mxu1 %v3806_v57  ;;  %2722 = vmatpush1.bf16.msra.mxu0 %v3701_v21 }
  0x3d   :  { %2724 = vmatprep.subr.bf16.mxu0 %v3711_v29 }
  0x3f   :  { %2714 = vmatpush1.bf16.msra.mxu1 %v3812_v63 }
  0x40   :  { %2748 = vmatprep.subr.bf16.mxu1 %v3717_v34  ;;  %2726 = vmatpush1.bf16.msra.mxu0 %v3720_v37 }
  0x41   :  { %2728 = vmatprep.subr.bf16.mxu0 %v3724_v41 }
  0x42   :  { %455 = vmatmul.mubr.f32.vlgmr.msra.gmra.mrb[8].mxu1 %v3796_v46 }
  0x43   :  { %2750 = vmatpush1.bf16.msra.mxu1 %v3728_v47  ;;  %633 = vmatprep.mubr.f32.mxu1 %v3602_v0 }
  0x44   :  { %2752 = vmatprep.subr.bf16.mxu1 %v3733_v49  ;;  %2730 = vmatpush1.bf16.msra.mxu0 %v3731_v48 }
  0x45   :  { %2732 = vmatprep.subr.bf16.mxu0 %v3736_v53 }
  0x47   :  { %2754 = vmatpush1.bf16.msra.mxu1 %v3740_v59 }
  0x48   :  { %2756 = vmatprep.subr.bf16.mxu1 %v3747_v61  ;;  %2734 = vmatpush1.bf16.msra.mxu0 %v3745_v60 }
  0x49   :  { %2736 = vmatprep.subr.bf16.mxu0 %v3750_v2 }
  0x4b   :  { %2758 = vmatpush1.bf16.msra.mxu1 %v3754_v9 }
  0x4c   :  { %2760 = vmatprep.subr.bf16.mxu1 %v3761_v11  ;;  %2738 = vmatpush1.bf16.msra.mxu0 %v3759_v10 }
  0x4d   :  { %2740 = vmatprep.subr.bf16.mxu0 %v3764_v16 }
  0x4f   :  { %2762 = vmatpush1.bf16.msra.mxu1 %v3767_v24 }
  0x50   :  { %2764 = vmatprep.subr.bf16.mxu1 %v3773_v26  ;;  %2742 = vmatpush1.bf16.msra.mxu0 %v3771_v25 }
  0x51   :  { %2744 = vmatprep.subr.bf16.mxu0 %v3776_v31 }
  0x53   :  { %2766 = vmatpush1.bf16.msra.mxu1 %v3779_v36 }
  0x54   :  { %2768 = vmatprep.subr.bf16.mxu1 %v3785_v39  ;;  %2746 = vmatpush1.bf16.msra.mxu0 %v3783_v38 }
  0x55   :  { %2780 = vmatprep.subr.bf16.mxu0 %v3684_v8 }
  0x57   :  { %2770 = vmatpush1.bf16.msra.mxu1 %v3789_v45 }
  0x58   :  { %2772 = vmatprep.subr.bf16.mxu1 %v3798_v50 }
  0x5b   :  { %2774 = vmatpush1.bf16.msra.mxu1 %v3803_v56 }
  0x5c   :  { %2776 = vmatprep.subr.bf16.mxu1 %v3806_v57 }
  0x5f   :  { %2778 = vmatpush1.bf16.msra.mxu1 %v3812_v63 }
  0x60   :  { %2812 = vmatprep.subr.bf16.mxu1 %v3717_v34 }
  0xed   :  { %v151_v14 = vpop.f32.mrb[0].mxu1 }
  0xee   :  { %v152_v15 = vadd.f32 %v151_v14, %v61_v7  ;;  %v153_v18 = vpop.f32.mrb[1].mxu1 }
  0xef   :  { %v154_v20 = vadd.f32 %v153_v18, %v65_v12 }
  0xf0   :  { %239 = vst [vmem:[#allocation2] sm:$0xff] %v152_v15 }
  0xf1   :  { %240 = vst [vmem:[#allocation2 + $0x8] sm:$0xff] %v154_v20  ;;  %v157_v23 = vpop.f32.mrb[2].mxu1 }
  0xf2   :  { %v158_v27 = vadd.f32 %v157_v23, %v61_v7  ;;  %v159_v28 = vpop.f32.mrb[3].mxu1 }
  0xf3   :  { %v160_v32 = vadd.f32 %v159_v28, %v65_v12 }
  0xf4   :  { %243 = vst [vmem:[#allocation2 + $0x20] sm:$0xff] %v158_v27 }
  0xf5   :  { %244 = vst [vmem:[#allocation2 + $0x28] sm:$0xff] %v160_v32  ;;  %v228_v35 = vpop.f32.mrb[4].mxu1 }
  0xf6   :  { %v229_v40 = vadd.f32 %v228_v35, %v69_v30  ;;  %v230_v42 = vpop.f32.mrb[5].mxu1  ;;  %v3852_v35 = vand.u32 127, %v58_v1 }
  0xf7   :  { %v231_v43 = vadd.f32 %v230_v42, %v73_v33  ;;  %v315_v55 = vld [vmem:[#allocation2] sm:$0x3] }
  0xf8   :  { %241 = vst [vmem:[#allocation2 + $0x10] sm:$0xff] %v229_v40  ;;  %v316_v3 = vld [vmem:[#allocation2 + $0x8] sm:$0x3]  ;;  %v312_v40 = vld [vmem:[%s4298_s5] sm:$0x3]  ;;  %vm490_vm1 = vcmp.lt.s32.totalorder %v3852_v35, 32 }
  0xf9   :  { %242 = vst [vmem:[#allocation2 + $0x18] sm:$0xff] %v231_v43  ;;  %v234_v44 = vpop.f32.mrb[6].mxu1  ;;  %vm683_vm2 = vcmp.lt.s32.totalorder %v3852_v35, 64  ;;  %vm882_vm3 = vcmp.lt.s32.totalorder %v3852_v35, 96  ;;  %vm2027_vm4 = vcmp.ge.s32.totalorder %v3852_v35, 32  ;;  %vm2222_vm5 = vcmp.ge.s32.totalorder %v3852_v35, 64 }
  0xfa   :  { %v235_v51 = vadd.f32 %v234_v44, %v69_v30  ;;  %v236_v52 = vpop.f32.mrb[7].mxu1  ;;  %vm2416_vm6 = vcmp.ge.s32.totalorder %v3852_v35, 96 }
  0xfb   :  { %v237_v54 = vadd.f32 %v236_v52, %v73_v33 }
  0xfc   :  { %245 = vst [vmem:[#allocation2 + $0x30] sm:$0xff] %v235_v51 }
  0xfd   :  { %246 = vst [vmem:[#allocation2 + $0x38] sm:$0xff] %v237_v54 }
  0xff   :  { %v317_v12 = vld [vmem:[#allocation2 + $0x10] sm:$0x3] }
 0x100   :  { %v318_v18 = vld [vmem:[#allocation2 + $0x18] sm:$0x3] }
 0x10a   :  { %v385_v58 = vpop.f32.mrb[0].mxu0 }
 0x10b   :  { %v461_v62 = vadd.f32 %v385_v58, %v315_v55  ;;  %v387_v4 = vpop.f32.mrb[1].mxu0 }
 0x10c   :  { %v462_v5 = vadd.f32 %v387_v4, %v316_v3 }
 0x10d   :  { %v2554_v6 = vmul.f32 -1.442695, %v461_v62 }
 0x10e   :  { %v2555_v7 = vmul.f32 -1.442695, %v462_v5 }
 0x10f   :  { %3391 = vpow2.f32 %v2554_v6 }
 0x110   :  { %3393 = vpow2.f32 %v2555_v7 }
 0x115   :  { %v456_v14 = vpop.f32.mrb[8].mxu1 }
 0x116   :  { %v463_v15 = vadd.f32 %v456_v14, %v317_v12  ;;  %v458_v19 = vpop.f32.mrb[9].mxu1  ;;  %v494_v12 = vld [vmem:[#allocation2] sm:$0xc] }
 0x117   :  { %v464_v20 = vadd.f32 %v458_v19, %v318_v18  ;;  %v495_v18 = vld [vmem:[#allocation2 + $0x8] sm:$0xc] }
 0x118   :  { %v2556_v22 = vmul.f32 -1.442695, %v463_v15 }
 0x119   :  { %v3392_v23 = vpop.eup %3391 }
 0x11a   :  { %v3394_v27 = vpop.eup %3393  ;;  %v474_v28 = vadd.f32 1.0, %v3392_v23  ;;  %3395 = vpow2.f32 %v2556_v22 }
 0x11b   :  { %v475_v30 = vadd.f32 1.0, %v3394_v27  ;;  %3397 = vtanh.f32 %v464_v20  ;;  %v496_v27 = vld [vmem:[#allocation2 + $0x10] sm:$0xc] }
 0x11c   :  { %3399 = vrcp.f32 %v474_v28 }
 0x11d   :  { %3401 = vrcp.f32 %v475_v30 }
 0x124   :  { %v3396_v32 = vpop.eup %3395 }
 0x125   :  { %v3398_v33 = vpop.eup %3397  ;;  %v476_v44 = vadd.f32 1.0, %v3396_v32  ;;  %v497_v32 = vld [vmem:[#allocation2 + $0x18] sm:$0xc] }
 0x126   :  { %v3400_v42 = vpop.eup %3399 }
 0x127   :  { %v3402_v43 = vpop.eup %3401  ;;  %v485_v51 = vmul.f32 %v3400_v42, %v3398_v33  ;;  %3403 = vrcp.f32 %v476_v44 }
 0x128   :  { %v484_v52 = vmul.f32 %v3402_v43, %v312_v40 }
 0x12a   :  { %v486_v54 = vadd.f32 %v485_v51, %v484_v52 }
 0x12c   :  { %3405 = vtanh.f32 %v486_v54  ;;  %v3858_v55 = vsel %vm490_vm1, %v486_v54, %v312_v40 }
 0x131   :  { %v3404_v58 = vpop.eup %3403 }
 0x136   :  { %v3406_v62 = vpop.eup %3405 }
 0x137   :  { %v488_v1 = vmul.f32 %v3406_v62, %v3404_v58  ;;  %v676_v62 = vrot.slane %v3858_v55, 6 }
 0x139   :  { %v3861_v3 = vsel %vm490_vm1, %v488_v1, %v3796_v46 }
 0x13a   :  { %563 = vmatmul.mubr.f32.vlgmr.msra.gmra.mrb[2].mxu0 %v3861_v3  ;;  %634 = vmatmul.mubr.f32.vlgmr.msra.gmra.mrb[10].mxu1 %v3861_v3 }
 0x13b   :  { %2782 = vmatpush1.bf16.msra.mxu0 %v3689_v13  ;;  %2814 = vmatpush1.bf16.msra.mxu1 %v3728_v47 }
 0x13c   :  { %2784 = vmatprep.subr.bf16.mxu0 %v3692_v17  ;;  %2816 = vmatprep.subr.bf16.mxu1 %v3733_v49 }
 0x13d   :  { %761 = vmatprep.mubr.f32.mxu0 %v3602_v0  ;;  %832 = vmatprep.mubr.f32.mxu1 %v3602_v0 }
 0x13f   :  { %2786 = vmatpush1.bf16.msra.mxu0 %v3701_v21  ;;  %2818 = vmatpush1.bf16.msra.mxu1 %v3740_v59 }
 0x140   :  { %2788 = vmatprep.subr.bf16.mxu0 %v3711_v29  ;;  %2820 = vmatprep.subr.bf16.mxu1 %v3747_v61 }
 0x143   :  { %2790 = vmatpush1.bf16.msra.mxu0 %v3720_v37  ;;  %2822 = vmatpush1.bf16.msra.mxu1 %v3754_v9 }
 0x144   :  { %2792 = vmatprep.subr.bf16.mxu0 %v3724_v41  ;;  %2824 = vmatprep.subr.bf16.mxu1 %v3761_v11 }
 0x147   :  { %2794 = vmatpush1.bf16.msra.mxu0 %v3731_v48  ;;  %2826 = vmatpush1.bf16.msra.mxu1 %v3767_v24 }
 0x148   :  { %2796 = vmatprep.subr.bf16.mxu0 %v3736_v53  ;;  %2828 = vmatprep.subr.bf16.mxu1 %v3773_v26 }
 0x14b   :  { %2798 = vmatpush1.bf16.msra.mxu0 %v3745_v60  ;;  %2830 = vmatpush1.bf16.msra.mxu1 %v3779_v36 }
 0x14c   :  { %2800 = vmatprep.subr.bf16.mxu0 %v3750_v2  ;;  %2832 = vmatprep.subr.bf16.mxu1 %v3785_v39 }
 0x14f   :  { %2802 = vmatpush1.bf16.msra.mxu0 %v3759_v10  ;;  %2834 = vmatpush1.bf16.msra.mxu1 %v3789_v45 }
 0x150   :  { %2804 = vmatprep.subr.bf16.mxu0 %v3764_v16  ;;  %2836 = vmatprep.subr.bf16.mxu1 %v3798_v50 }
 0x153   :  { %2806 = vmatpush1.bf16.msra.mxu0 %v3771_v25  ;;  %2838 = vmatpush1.bf16.msra.mxu1 %v3803_v56 }
 0x154   :  { %2808 = vmatprep.subr.bf16.mxu0 %v3776_v31  ;;  %2840 = vmatprep.subr.bf16.mxu1 %v3806_v57 }
 0x157   :  { %2810 = vmatpush1.bf16.msra.mxu0 %v3783_v38  ;;  %2842 = vmatpush1.bf16.msra.mxu1 %v3812_v63 }
 0x158   :  { %2844 = vmatprep.subr.bf16.mxu0 %v3684_v8  ;;  %2876 = vmatprep.subr.bf16.mxu1 %v3717_v34 }
 0x20d   :  { %v564_v46 = vpop.f32.mrb[2].mxu0  ;;  %v635_v4 = vpop.f32.mrb[10].mxu1 }
 0x20e   :  { %v644_v5 = vrot.slane %v564_v46, 6  ;;  %v566_v6 = vpop.f32.mrb[3].mxu0  ;;  %v637_v7 = vpop.f32.mrb[11].mxu1  ;;  %v646_v23 = vrot.slane %v635_v4, 6 }
 0x20f   :  { %v645_v14 = vrot.slane %v566_v6, 6  ;;  %v647_v28 = vrot.slane %v637_v7, 6 }
 0x210   :  { %v652_v15 = vadd.f32 %v644_v5, %v494_v12  ;;  %v654_v30 = vadd.f32 %v646_v23, %v496_v27 }
 0x211   :  { %v653_v19 = vadd.f32 %v645_v14, %v495_v18  ;;  %v655_v33 = vadd.f32 %v647_v28, %v497_v32  ;;  %v690_v28 = vld [vmem:[#allocation2] sm:$0x30] }
 0x212   :  { %v2557_v20 = vmul.f32 -1.442695, %v652_v15  ;;  %v2559_v40 = vmul.f32 -1.442695, %v654_v30  ;;  %v687_v15 = vrot.slane %v3861_v3, 6 }
 0x213   :  { %v2558_v22 = vmul.f32 -1.442695, %v653_v19 }
 0x214   :  { %3407 = vpow2.f32 %v2557_v20 }
 0x215   :  { %3409 = vpow2.f32 %v2558_v22 }
 0x216   :  { %3411 = vtanh.f32 %v655_v33  ;;  %v691_v33 = vld [vmem:[#allocation2 + $0x8] sm:$0x30] }
 0x217   :  { %3413 = vpow2.f32 %v2559_v40 }
 0x21e   :  { %v3408_v42 = vpop.eup %3407 }
 0x21f   :  { %v665_v43 = vadd.f32 1.0, %v3408_v42  ;;  %v3410_v44 = vpop.eup %3409 }
 0x220   :  { %v666_v51 = vadd.f32 1.0, %v3410_v44  ;;  %v3412_v52 = vpop.eup %3411 }
 0x221   :  { %3415 = vrcp.f32 %v665_v43  ;;  %v3414_v54 = vpop.eup %3413 }
 0x222   :  { %3417 = vrcp.f32 %v666_v51  ;;  %v667_v4 = vadd.f32 1.0, %v3414_v54  ;;  %v692_v51 = vld [vmem:[#allocation2 + $0x10] sm:$0x30] }
 0x224   :  { %3419 = vrcp.f32 %v667_v4 }
 0x22b   :  { %v3416_v58 = vpop.eup %3415 }
 0x22c   :  { %v679_v1 = vmul.f32 %v3416_v58, %v3412_v52  ;;  %v3418_v46 = vpop.eup %3417  ;;  %v693_v58 = vld [vmem:[#allocation2 + $0x18] sm:$0x30] }
 0x22d   :  { %v678_v5 = vmul.f32 %v3418_v46, %v676_v62 }
 0x22e   :  { %v3420_v12 = vpop.eup %3419 }
 0x22f   :  { %v680_v6 = vadd.f32 %v679_v1, %v678_v5 }
 0x231   :  { %3421 = vtanh.f32 %v680_v6  ;;  %v3901_v7 = vsel %vm683_vm2, %v680_v6, %v676_v62 }
 0x23b   :  { %v3422_v14 = vpop.eup %3421 }
 0x23c   :  { %v682_v18 = vmul.f32 %v3422_v14, %v3420_v12 }
 0x23e   :  { %v3904_v19 = vsel %vm683_vm2, %v682_v18, %v687_v15  ;;  %v875_v18 = vrot.slane %v3901_v7, 6 }
 0x23f   :  { %v695_v55 = vrot.slane %v3904_v19, 2 }
 0x241   :  { %762 = vmatmul.mubr.f32.vlgmr.msra.gmra.mrb[4].mxu0 %v695_v55  ;;  %833 = vmatmul.mubr.f32.vlgmr.msra.gmra.mrb[12].mxu1 %v695_v55 }
 0x242   :  { %2846 = vmatpush1.bf16.msra.mxu0 %v3689_v13  ;;  %2878 = vmatpush1.bf16.msra.mxu1 %v3728_v47 }
 0x243   :  { %2848 = vmatprep.subr.bf16.mxu0 %v3692_v17  ;;  %2880 = vmatprep.subr.bf16.mxu1 %v3733_v49 }
 0x244   :  { %959 = vmatprep.mubr.f32.mxu0 %v3602_v0  ;;  %1030 = vmatprep.mubr.f32.mxu1 %v3602_v0 }
 0x246   :  { %2850 = vmatpush1.bf16.msra.mxu0 %v3701_v21  ;;  %2882 = vmatpush1.bf16.msra.mxu1 %v3740_v59 }
 0x247   :  { %2852 = vmatprep.subr.bf16.mxu0 %v3711_v29  ;;  %2884 = vmatprep.subr.bf16.mxu1 %v3747_v61 }
 0x24a   :  { %2854 = vmatpush1.bf16.msra.mxu0 %v3720_v37  ;;  %2886 = vmatpush1.bf16.msra.mxu1 %v3754_v9 }
 0x24b   :  { %2856 = vmatprep.subr.bf16.mxu0 %v3724_v41  ;;  %2888 = vmatprep.subr.bf16.mxu1 %v3761_v11 }
 0x24e   :  { %2858 = vmatpush1.bf16.msra.mxu0 %v3731_v48  ;;  %2890 = vmatpush1.bf16.msra.mxu1 %v3767_v24 }
 0x24f   :  { %2860 = vmatprep.subr.bf16.mxu0 %v3736_v53  ;;  %2892 = vmatprep.subr.bf16.mxu1 %v3773_v26 }
 0x252   :  { %2862 = vmatpush1.bf16.msra.mxu0 %v3745_v60  ;;  %2894 = vmatpush1.bf16.msra.mxu1 %v3779_v36 }
 0x253   :  { %2864 = vmatprep.subr.bf16.mxu0 %v3750_v2  ;;  %2896 = vmatprep.subr.bf16.mxu1 %v3785_v39 }
 0x256   :  { %2866 = vmatpush1.bf16.msra.mxu0 %v3759_v10  ;;  %2898 = vmatpush1.bf16.msra.mxu1 %v3789_v45 }
 0x257   :  { %2868 = vmatprep.subr.bf16.mxu0 %v3764_v16  ;;  %2900 = vmatprep.subr.bf16.mxu1 %v3798_v50 }
 0x25a   :  { %2870 = vmatpush1.bf16.msra.mxu0 %v3771_v25  ;;  %2902 = vmatpush1.bf16.msra.mxu1 %v3803_v56 }
 0x25b   :  { %2872 = vmatprep.subr.bf16.mxu0 %v3776_v31  ;;  %2904 = vmatprep.subr.bf16.mxu1 %v3806_v57 }
 0x25e   :  { %2874 = vmatpush1.bf16.msra.mxu0 %v3783_v38  ;;  %2906 = vmatpush1.bf16.msra.mxu1 %v3812_v63 }
 0x25f   :  { %2908 = vmatprep.subr.bf16.mxu0 %v3684_v8  ;;  %2940 = vmatprep.subr.bf16.mxu1 %v3717_v34 }
 0x314   :  { %v763_v3 = vpop.f32.mrb[4].mxu0  ;;  %v834_v20 = vpop.f32.mrb[12].mxu1 }
 0x315   :  { %v843_v22 = vrot.slane %v763_v3, 4  ;;  %v765_v23 = vpop.f32.mrb[5].mxu0  ;;  %v836_v27 = vpop.f32.mrb[13].mxu1  ;;  %v845_v44 = vrot.slane %v834_v20, 4 }
 0x316   :  { %v844_v30 = vrot.slane %v765_v23, 4  ;;  %v846_v52 = vrot.slane %v836_v27, 4 }
 0x317   :  { %v851_v32 = vadd.f32 %v843_v22, %v690_v28  ;;  %v853_v54 = vadd.f32 %v845_v44, %v692_v51 }
 0x318   :  { %v852_v40 = vadd.f32 %v844_v30, %v691_v33  ;;  %v854_v62 = vadd.f32 %v846_v52, %v693_v58  ;;  %v888_v52 = vld [vmem:[#allocation2] sm:$0xc0] }
 0x319   :  { %v2560_v42 = vmul.f32 -1.442695, %v851_v32  ;;  %v2562_v1 = vmul.f32 -1.442695, %v853_v54  ;;  %v885_v32 = vrot.slane %v3904_v19, 6 }
 0x31a   :  { %v2561_v43 = vmul.f32 -1.442695, %v852_v40 }
 0x31b   :  { %3423 = vpow2.f32 %v2560_v42 }
 0x31c   :  { %3425 = vpow2.f32 %v2561_v43 }
 0x31d   :  { %3427 = vtanh.f32 %v854_v62  ;;  %v889_v62 = vld [vmem:[#allocation2 + $0x8] sm:$0xc0] }
 0x31e   :  { %3429 = vpow2.f32 %v2562_v1 }
 0x325   :  { %v3424_v46 = vpop.eup %3423 }
 0x326   :  { %v864_v4 = vadd.f32 1.0, %v3424_v46  ;;  %v3426_v5 = vpop.eup %3425 }
 0x327   :  { %v865_v6 = vadd.f32 1.0, %v3426_v5  ;;  %v3428_v12 = vpop.eup %3427 }
 0x328   :  { %3431 = vrcp.f32 %v864_v4  ;;  %v3430_v14 = vpop.eup %3429 }
 0x329   :  { %3433 = vrcp.f32 %v865_v6  ;;  %v866_v20 = vadd.f32 1.0, %v3430_v14  ;;  %v890_v6 = vld [vmem:[#allocation2 + $0x10] sm:$0xc0] }
 0x32b   :  { %3435 = vrcp.f32 %v866_v20 }
 0x332   :  { %v3432_v15 = vpop.eup %3431 }
 0x333   :  { %v878_v55 = vmul.f32 %v3432_v15, %v3428_v12  ;;  %v3434_v3 = vpop.eup %3433  ;;  %v891_v15 = vld [vmem:[#allocation2 + $0x18] sm:$0xc0] }
 0x334   :  { %v877_v22 = vmul.f32 %v3434_v3, %v875_v18 }
 0x335   :  { %v3436_v28 = vpop.eup %3435 }
 0x336   :  { %v879_v23 = vadd.f32 %v878_v55, %v877_v22 }
 0x338   :  { %3437 = vtanh.f32 %v879_v23  ;;  %v3943_v27 = vsel %vm882_vm3, %v879_v23, %v875_v18 }
 0x342   :  { %v3438_v30 = vpop.eup %3437 }
 0x343   :  { %v881_v33 = vmul.f32 %v3438_v30, %v3436_v28 }
 0x345   :  { %v887_v40 = vsel %vm882_vm3, %v881_v33, %v885_v32  ;;  %v1073_v33 = vrot.slane %v3943_v27, 6  ;;  %v1081_v27 = vld [vmem:[#allocation2 + $0x20] sm:$0x3] }
 0x346   :  { %v893_v42 = vrot.slane %v887_v40, 4 }
 0x348   :  { %960 = vmatmul.mubr.f32.vlgmr.msra.gmra.mrb[6].mxu0 %v893_v42  ;;  %1031 = vmatmul.mubr.f32.vlgmr.msra.gmra.mrb[14].mxu1 %v893_v42 }
 0x349   :  { %2910 = vmatpush1.bf16.msra.mxu0 %v3689_v13  ;;  %2942 = vmatpush1.bf16.msra.mxu1 %v3728_v47 }
 0x34a   :  { %2912 = vmatprep.subr.bf16.mxu0 %v3692_v17  ;;  %2944 = vmatprep.subr.bf16.mxu1 %v3733_v49 }
 0x34b   :  { %1152 = vmatprep.mubr.f32.mxu0 %v3602_v0  ;;  %1223 = vmatprep.mubr.f32.mxu1 %v3602_v0 }
 0x34d   :  { %2914 = vmatpush1.bf16.msra.mxu0 %v3701_v21  ;;  %2946 = vmatpush1.bf16.msra.mxu1 %v3740_v59 }
 0x34e   :  { %2916 = vmatprep.subr.bf16.mxu0 %v3711_v29  ;;  %2948 = vmatprep.subr.bf16.mxu1 %v3747_v61 }
 0x351   :  { %2918 = vmatpush1.bf16.msra.mxu0 %v3720_v37  ;;  %2950 = vmatpush1.bf16.msra.mxu1 %v3754_v9 }
 0x352   :  { %2920 = vmatprep.subr.bf16.mxu0 %v3724_v41  ;;  %2952 = vmatprep.subr.bf16.mxu1 %v3761_v11 }
 0x355   :  { %2922 = vmatpush1.bf16.msra.mxu0 %v3731_v48  ;;  %2954 = vmatpush1.bf16.msra.mxu1 %v3767_v24 }
 0x356   :  { %2924 = vmatprep.subr.bf16.mxu0 %v3736_v53  ;;  %2956 = vmatprep.subr.bf16.mxu1 %v3773_v26 }
 0x359   :  { %2926 = vmatpush1.bf16.msra.mxu0 %v3745_v60  ;;  %2958 = vmatpush1.bf16.msra.mxu1 %v3779_v36 }
 0x35a   :  { %2928 = vmatprep.subr.bf16.mxu0 %v3750_v2  ;;  %2960 = vmatprep.subr.bf16.mxu1 %v3785_v39 }
 0x35d   :  { %2930 = vmatpush1.bf16.msra.mxu0 %v3759_v10  ;;  %2962 = vmatpush1.bf16.msra.mxu1 %v3789_v45 }
 0x35e   :  { %2932 = vmatprep.subr.bf16.mxu0 %v3764_v16  ;;  %2964 = vmatprep.subr.bf16.mxu1 %v3798_v50 }
 0x361   :  { %2934 = vmatpush1.bf16.msra.mxu0 %v3771_v25  ;;  %2966 = vmatpush1.bf16.msra.mxu1 %v3803_v56 }
 0x362   :  { %2936 = vmatprep.subr.bf16.mxu0 %v3776_v31  ;;  %2968 = vmatprep.subr.bf16.mxu1 %v3806_v57 }
 0x365   :  { %2938 = vmatpush1.bf16.msra.mxu0 %v3783_v38  ;;  %2970 = vmatpush1.bf16.msra.mxu1 %v3812_v63 }
 0x366   :  { %2972 = vmatprep.subr.bf16.mxu0 %v3684_v8  ;;  %3004 = vmatprep.subr.bf16.mxu1 %v3717_v34 }
 0x41b   :  { %v961_v7 = vpop.f32.mrb[6].mxu0  ;;  %v1032_v19 = vpop.f32.mrb[14].mxu1 }
 0x41c   :  { %v1041_v43 = vrot.slane %v961_v7, 2  ;;  %v963_v44 = vpop.f32.mrb[7].mxu0  ;;  %v1034_v51 = vpop.f32.mrb[15].mxu1  ;;  %v1043_v5 = vrot.slane %v1032_v19, 2 }
 0x41d   :  { %v1042_v54 = vrot.slane %v963_v44, 2  ;;  %v1044_v12 = vrot.slane %v1034_v51, 2 }
 0x41e   :  { %v1049_v58 = vadd.f32 %v1041_v43, %v888_v52  ;;  %v1051_v14 = vadd.f32 %v1043_v5, %v890_v6 }
 0x41f   :  { %v1050_v1 = vadd.f32 %v1042_v54, %v889_v62  ;;  %v1052_v18 = vadd.f32 %v1044_v12, %v891_v15  ;;  %v1083_v15 = vld [vmem:[#allocation2 + $0x30] sm:$0x3] }
 0x420   :  { %v2563_v46 = vmul.f32 -1.442695, %v1049_v58  ;;  %v2565_v55 = vmul.f32 -1.442695, %v1051_v14 }
 0x421   :  { %v2564_v4 = vmul.f32 -1.442695, %v1050_v1 }
 0x422   :  { %3439 = vpow2.f32 %v2563_v46  ;;  %v1082_v46 = vld [vmem:[#allocation2 + $0x28] sm:$0x3] }
 0x423   :  { %3441 = vpow2.f32 %v2564_v4 }
 0x424   :  { %3443 = vtanh.f32 %v1052_v18 }
 0x425   :  { %3445 = vpow2.f32 %v2565_v55  ;;  %v1084_v55 = vld [vmem:[#allocation2 + $0x38] sm:$0x3] }
 0x42c   :  { %v3440_v3 = vpop.eup %3439 }
 0x42d   :  { %v1062_v20 = vadd.f32 1.0, %v3440_v3  ;;  %v3442_v22 = vpop.eup %3441 }
 0x42e   :  { %v1063_v23 = vadd.f32 1.0, %v3442_v22  ;;  %v3444_v28 = vpop.eup %3443 }
 0x42f   :  { %3447 = vrcp.f32 %v1062_v20  ;;  %v3446_v30 = vpop.eup %3445 }
 0x430   :  { %3449 = vrcp.f32 %v1063_v23  ;;  %v1064_v7 = vadd.f32 1.0, %v3446_v30 }
 0x432   :  { %3451 = vrcp.f32 %v1064_v7 }
 0x439   :  { %v3448_v32 = vpop.eup %3447 }
 0x43a   :  { %v1076_v40 = vmul.f32 %v3448_v32, %v3444_v28  ;;  %v3450_v42 = vpop.eup %3449 }
 0x43b   :  { %v1075_v19 = vmul.f32 %v3450_v42, %v1073_v33 }
 0x43c   :  { %v3452_v44 = vpop.eup %3451 }
 0x43d   :  { %v3981_v43 = vadd.f32 %v1076_v40, %v1075_v19 }
 0x43f   :  { %3453 = vtanh.f32 %v3981_v43  ;;  %v1254_v42 = vrot.slane %v3981_v43, 6 }
 0x449   :  { %v3454_v51 = vpop.eup %3453 }
 0x44a   :  { %v1079_v52 = vmul.f32 %v3454_v51, %v3452_v44 }
 0x44c   :  { %1080 = vst [vmem:[#allocation3 - $0x6] sm:$0xc0] %v1079_v52  ;;  %v1086_v54 = vrot.slane %v1079_v52, 6 }
 0x44e   :  { %1153 = vmatmul.mubr.f32.vlgmr.msra.gmra.mrb[8].mxu0 %v1086_v54  ;;  %1224 = vmatmul.mubr.f32.vlgmr.msra.gmra.mrb[16].mxu1 %v1086_v54 }
 0x44f   :  { %2974 = vmatpush1.bf16.msra.mxu0 %v3689_v13  ;;  %3006 = vmatpush1.bf16.msra.mxu1 %v3728_v47 }
 0x450   :  { %2976 = vmatprep.subr.bf16.mxu0 %v3692_v17  ;;  %3008 = vmatprep.subr.bf16.mxu1 %v3733_v49 }
 0x451   :  { %1330 = vmatprep.mubr.f32.mxu0 %v3602_v0  ;;  %1401 = vmatprep.mubr.f32.mxu1 %v3602_v0 }
 0x453   :  { %2978 = vmatpush1.bf16.msra.mxu0 %v3701_v21  ;;  %3010 = vmatpush1.bf16.msra.mxu1 %v3740_v59 }
 0x454   :  { %2980 = vmatprep.subr.bf16.mxu0 %v3711_v29  ;;  %3012 = vmatprep.subr.bf16.mxu1 %v3747_v61 }
 0x457   :  { %2982 = vmatpush1.bf16.msra.mxu0 %v3720_v37  ;;  %3014 = vmatpush1.bf16.msra.mxu1 %v3754_v9 }
 0x458   :  { %2984 = vmatprep.subr.bf16.mxu0 %v3724_v41  ;;  %3016 = vmatprep.subr.bf16.mxu1 %v3761_v11 }
 0x45b   :  { %2986 = vmatpush1.bf16.msra.mxu0 %v3731_v48  ;;  %3018 = vmatpush1.bf16.msra.mxu1 %v3767_v24 }
 0x45c   :  { %2988 = vmatprep.subr.bf16.mxu0 %v3736_v53  ;;  %3020 = vmatprep.subr.bf16.mxu1 %v3773_v26 }
 0x45f   :  { %2990 = vmatpush1.bf16.msra.mxu0 %v3745_v60  ;;  %3022 = vmatpush1.bf16.msra.mxu1 %v3779_v36 }
 0x460   :  { %2992 = vmatprep.subr.bf16.mxu0 %v3750_v2  ;;  %3024 = vmatprep.subr.bf16.mxu1 %v3785_v39 }
 0x463   :  { %2994 = vmatpush1.bf16.msra.mxu0 %v3759_v10  ;;  %3026 = vmatpush1.bf16.msra.mxu1 %v3789_v45 }
 0x464   :  { %2996 = vmatprep.subr.bf16.mxu0 %v3764_v16  ;;  %3028 = vmatprep.subr.bf16.mxu1 %v3798_v50 }
 0x467   :  { %2998 = vmatpush1.bf16.msra.mxu0 %v3771_v25  ;;  %3030 = vmatpush1.bf16.msra.mxu1 %v3803_v56 }
 0x468   :  { %3000 = vmatprep.subr.bf16.mxu0 %v3776_v31  ;;  %3032 = vmatprep.subr.bf16.mxu1 %v3806_v57 }
 0x46b   :  { %3002 = vmatpush1.bf16.msra.mxu0 %v3783_v38  ;;  %3034 = vmatpush1.bf16.msra.mxu1 %v3812_v63 }
 0x46c   :  { %3036 = vmatprep.subr.bf16.mxu0 %v3684_v8  ;;  %3068 = vmatprep.subr.bf16.mxu1 %v3717_v34 }
 0x521   :  { %v1154_v58 = vpop.f32.mrb[8].mxu0  ;;  %v1225_v62 = vpop.f32.mrb[16].mxu1 }
 0x522   :  { %v1230_v1 = vadd.f32 %v1154_v58, %v1081_v27  ;;  %v1156_v4 = vpop.f32.mrb[9].mxu0  ;;  %v1227_v5 = vpop.f32.mrb[17].mxu1  ;;  %v1232_v18 = vadd.f32 %v1225_v62, %v1083_v15 }
 0x523   :  { %v1231_v6 = vadd.f32 %v1156_v4, %v1082_v46  ;;  %v1233_v3 = vadd.f32 %v1227_v5, %v1084_v55  ;;  %v1262_v5 = vld [vmem:[#allocation2 + $0x20] sm:$0xc] }
 0x524   :  { %v2566_v12 = vmul.f32 -1.442695, %v1230_v1  ;;  %v2568_v20 = vmul.f32 -1.442695, %v1232_v18 }
 0x525   :  { %v2567_v14 = vmul.f32 -1.442695, %v1231_v6 }
 0x526   :  { %3455 = vpow2.f32 %v2566_v12 }
 0x527   :  { %3457 = vpow2.f32 %v2567_v14  ;;  %v1263_v14 = vld [vmem:[#allocation2 + $0x28] sm:$0xc] }
 0x528   :  { %3459 = vtanh.f32 %v1233_v3 }
 0x529   :  { %3461 = vpow2.f32 %v2568_v20  ;;  %v1264_v20 = vld [vmem:[#allocation2 + $0x30] sm:$0xc] }
 0x530   :  { %v3456_v22 = vpop.eup %3455 }
 0x531   :  { %v1243_v23 = vadd.f32 1.0, %v3456_v22  ;;  %v3458_v28 = vpop.eup %3457 }
 0x532   :  { %v1244_v30 = vadd.f32 1.0, %v3458_v28  ;;  %v3460_v32 = vpop.eup %3459  ;;  %v1265_v28 = vld [vmem:[#allocation2 + $0x38] sm:$0xc] }
 0x533   :  { %3463 = vrcp.f32 %v1243_v23  ;;  %v3462_v33 = vpop.eup %3461 }
 0x534   :  { %3465 = vrcp.f32 %v1244_v30  ;;  %v1245_v44 = vadd.f32 1.0, %v3462_v33 }
 0x536   :  { %3467 = vrcp.f32 %v1245_v44 }
 0x53d   :  { %v3464_v40 = vpop.eup %3463 }
 0x53e   :  { %v1257_v7 = vmul.f32 %v3464_v40, %v3460_v32  ;;  %v3466_v19 = vpop.eup %3465 }
 0x53f   :  { %v1256_v51 = vmul.f32 %v3466_v19, %v1254_v42 }
 0x540   :  { %v3468_v54 = vpop.eup %3467 }
 0x541   :  { %v4019_v52 = vadd.f32 %v1257_v7, %v1256_v51 }
 0x543   :  { %3469 = vtanh.f32 %v4019_v52 }
 0x54d   :  { %v3470_v27 = vpop.eup %3469 }
 0x54e   :  { %v1260_v58 = vmul.f32 %v3470_v27, %v3468_v54  ;;  %v1444_v54 = vrot.slane %v4019_v52, 6 }
 0x550   :  { %1261 = vst [vmem:[#allocation3 + $0x2] sm:$0x3] %v1260_v58  ;;  %1331 = vmatmul.mubr.f32.vlgmr.msra.gmra.mrb[10].mxu0 %v1260_v58  ;;  %1402 = vmatmul.mubr.f32.vlgmr.msra.gmra.mrb[18].mxu1 %v1260_v58 }
 0x551   :  { %3038 = vmatpush1.bf16.msra.mxu0 %v3689_v13  ;;  %3070 = vmatpush1.bf16.msra.mxu1 %v3728_v47 }
 0x552   :  { %3040 = vmatprep.subr.bf16.mxu0 %v3692_v17  ;;  %3072 = vmatprep.subr.bf16.mxu1 %v3733_v49 }
 0x553   :  { %1523 = vmatprep.mubr.f32.mxu0 %v3602_v0  ;;  %1594 = vmatprep.mubr.f32.mxu1 %v3602_v0 }
 0x555   :  { %3042 = vmatpush1.bf16.msra.mxu0 %v3701_v21  ;;  %3074 = vmatpush1.bf16.msra.mxu1 %v3740_v59 }
 0x556   :  { %3044 = vmatprep.subr.bf16.mxu0 %v3711_v29  ;;  %3076 = vmatprep.subr.bf16.mxu1 %v3747_v61 }
 0x559   :  { %3046 = vmatpush1.bf16.msra.mxu0 %v3720_v37  ;;  %3078 = vmatpush1.bf16.msra.mxu1 %v3754_v9 }
 0x55a   :  { %3048 = vmatprep.subr.bf16.mxu0 %v3724_v41  ;;  %3080 = vmatprep.subr.bf16.mxu1 %v3761_v11 }
 0x55d   :  { %3050 = vmatpush1.bf16.msra.mxu0 %v3731_v48  ;;  %3082 = vmatpush1.bf16.msra.mxu1 %v3767_v24 }
 0x55e   :  { %3052 = vmatprep.subr.bf16.mxu0 %v3736_v53  ;;  %3084 = vmatprep.subr.bf16.mxu1 %v3773_v26 }
 0x561   :  { %3054 = vmatpush1.bf16.msra.mxu0 %v3745_v60  ;;  %3086 = vmatpush1.bf16.msra.mxu1 %v3779_v36 }
 0x562   :  { %3056 = vmatprep.subr.bf16.mxu0 %v3750_v2  ;;  %3088 = vmatprep.subr.bf16.mxu1 %v3785_v39 }
 0x565   :  { %3058 = vmatpush1.bf16.msra.mxu0 %v3759_v10  ;;  %3090 = vmatpush1.bf16.msra.mxu1 %v3789_v45 }
 0x566   :  { %3060 = vmatprep.subr.bf16.mxu0 %v3764_v16  ;;  %3092 = vmatprep.subr.bf16.mxu1 %v3798_v50 }
 0x569   :  { %3062 = vmatpush1.bf16.msra.mxu0 %v3771_v25  ;;  %3094 = vmatpush1.bf16.msra.mxu1 %v3803_v56 }
 0x56a   :  { %3064 = vmatprep.subr.bf16.mxu0 %v3776_v31  ;;  %3096 = vmatprep.subr.bf16.mxu1 %v3806_v57 }
 0x56d   :  { %3066 = vmatpush1.bf16.msra.mxu0 %v3783_v38  ;;  %3098 = vmatpush1.bf16.msra.mxu1 %v3812_v63 }
 0x56e   :  { %3100 = vmatprep.subr.bf16.mxu0 %v3684_v8  ;;  %3132 = vmatprep.subr.bf16.mxu1 %v3717_v34 }
 0x623   :  { %v1332_v43 = vpop.f32.mrb[10].mxu0  ;;  %v1403_v62 = vpop.f32.mrb[18].mxu1 }
 0x624   :  { %v1412_v1 = vrot.slane %v1332_v43, 6  ;;  %v1334_v46 = vpop.f32.mrb[11].mxu0  ;;  %v1405_v4 = vpop.f32.mrb[19].mxu1  ;;  %v1414_v3 = vrot.slane %v1403_v62, 6 }
 0x625   :  { %v1413_v6 = vrot.slane %v1334_v46, 6  ;;  %v1415_v22 = vrot.slane %v1405_v4, 6 }
 0x626   :  { %v1420_v12 = vadd.f32 %v1412_v1, %v1262_v5  ;;  %v1422_v23 = vadd.f32 %v1414_v3, %v1264_v20 }
 0x627   :  { %v1421_v15 = vadd.f32 %v1413_v6, %v1263_v14  ;;  %v1423_v30 = vadd.f32 %v1415_v22, %v1265_v28  ;;  %v1453_v22 = vld [vmem:[#allocation2 + $0x28] sm:$0x30] }
 0x628   :  { %v2569_v18 = vmul.f32 -1.442695, %v1420_v12  ;;  %v2571_v32 = vmul.f32 -1.442695, %v1422_v23 }
 0x629   :  { %v2570_v55 = vmul.f32 -1.442695, %v1421_v15 }
 0x62a   :  { %3471 = vpow2.f32 %v2569_v18 }
 0x62b   :  { %3473 = vpow2.f32 %v2570_v55  ;;  %v1452_v55 = vld [vmem:[#allocation2 + $0x20] sm:$0x30] }
 0x62c   :  { %3475 = vtanh.f32 %v1423_v30 }
 0x62d   :  { %3477 = vpow2.f32 %v2571_v32 }
 0x634   :  { %v3472_v33 = vpop.eup %3471 }
 0x635   :  { %v1433_v40 = vadd.f32 1.0, %v3472_v33  ;;  %v3474_v42 = vpop.eup %3473  ;;  %v1454_v33 = vld [vmem:[#allocation2 + $0x30] sm:$0x30] }
 0x636   :  { %v1434_v7 = vadd.f32 1.0, %v3474_v42  ;;  %v3476_v19 = vpop.eup %3475 }
 0x637   :  { %3479 = vrcp.f32 %v1433_v40  ;;  %v3478_v44 = vpop.eup %3477 }
 0x638   :  { %3481 = vrcp.f32 %v1434_v7  ;;  %v1435_v43 = vadd.f32 1.0, %v3478_v44  ;;  %v1455_v7 = vld [vmem:[#allocation2 + $0x38] sm:$0x30] }
 0x63a   :  { %3483 = vrcp.f32 %v1435_v43 }
 0x641   :  { %v3480_v51 = vpop.eup %3479 }
 0x642   :  { %v1447_v27 = vmul.f32 %v3480_v51, %v3476_v19  ;;  %v3482_v58 = vpop.eup %3481 }
 0x643   :  { %v1446_v62 = vmul.f32 %v3482_v58, %v1444_v54 }
 0x644   :  { %v3484_v46 = vpop.eup %3483 }
 0x645   :  { %v4057_v1 = vadd.f32 %v1447_v27, %v1446_v62 }
 0x647   :  { %3485 = vtanh.f32 %v4057_v1 }
 0x651   :  { %v3486_v4 = vpop.eup %3485 }
 0x652   :  { %v1450_v5 = vmul.f32 %v3486_v4, %v3484_v46  ;;  %v1637_v4 = vrot.slane %v4057_v1, 6 }
 0x654   :  { %1451 = vst [vmem:[#allocation3 + $0x2] sm:$0xc] %v1450_v5  ;;  %v1457_v6 = vrot.slane %v1450_v5, 2 }
 0x656   :  { %1524 = vmatmul.mubr.f32.vlgmr.msra.gmra.mrb[12].mxu0 %v1457_v6  ;;  %1595 = vmatmul.mubr.f32.vlgmr.msra.gmra.mrb[20].mxu1 %v1457_v6 }
 0x657   :  { %3102 = vmatpush1.bf16.msra.mxu0 %v3689_v13  ;;  %3134 = vmatpush1.bf16.msra.mxu1 %v3728_v47 }
 0x658   :  { %3104 = vmatprep.subr.bf16.mxu0 %v3692_v17  ;;  %3136 = vmatprep.subr.bf16.mxu1 %v3733_v49 }
 0x659   :  { %1716 = vmatprep.mubr.f32.mxu0 %v3602_v0  ;;  %1787 = vmatprep.mubr.f32.mxu1 %v3602_v0 }
 0x65b   :  { %3106 = vmatpush1.bf16.msra.mxu0 %v3701_v21  ;;  %3138 = vmatpush1.bf16.msra.mxu1 %v3740_v59 }
 0x65c   :  { %3108 = vmatprep.subr.bf16.mxu0 %v3711_v29  ;;  %3140 = vmatprep.subr.bf16.mxu1 %v3747_v61 }
 0x65f   :  { %3110 = vmatpush1.bf16.msra.mxu0 %v3720_v37  ;;  %3142 = vmatpush1.bf16.msra.mxu1 %v3754_v9 }
 0x660   :  { %3112 = vmatprep.subr.bf16.mxu0 %v3724_v41  ;;  %3144 = vmatprep.subr.bf16.mxu1 %v3761_v11 }
 0x663   :  { %3114 = vmatpush1.bf16.msra.mxu0 %v3731_v48  ;;  %3146 = vmatpush1.bf16.msra.mxu1 %v3767_v24 }
 0x664   :  { %3116 = vmatprep.subr.bf16.mxu0 %v3736_v53  ;;  %3148 = vmatprep.subr.bf16.mxu1 %v3773_v26 }
 0x667   :  { %3118 = vmatpush1.bf16.msra.mxu0 %v3745_v60  ;;  %3150 = vmatpush1.bf16.msra.mxu1 %v3779_v36 }
 0x668   :  { %3120 = vmatprep.subr.bf16.mxu0 %v3750_v2  ;;  %3152 = vmatprep.subr.bf16.mxu1 %v3785_v39 }
 0x66b   :  { %3122 = vmatpush1.bf16.msra.mxu0 %v3759_v10  ;;  %3154 = vmatpush1.bf16.msra.mxu1 %v3789_v45 }
 0x66c   :  { %3124 = vmatprep.subr.bf16.mxu0 %v3764_v16  ;;  %3156 = vmatprep.subr.bf16.mxu1 %v3798_v50 }
 0x66f   :  { %3126 = vmatpush1.bf16.msra.mxu0 %v3771_v25  ;;  %3158 = vmatpush1.bf16.msra.mxu1 %v3803_v56 }
 0x670   :  { %3128 = vmatprep.subr.bf16.mxu0 %v3776_v31  ;;  %3160 = vmatprep.subr.bf16.mxu1 %v3806_v57 }
 0x673   :  { %3130 = vmatpush1.bf16.msra.mxu0 %v3783_v38  ;;  %3162 = vmatpush1.bf16.msra.mxu1 %v3812_v63 }
 0x674   :  { %3164 = vmatprep.subr.bf16.mxu0 %v3684_v8  ;;  %3196 = vmatprep.subr.bf16.mxu1 %v3717_v34 }
 0x729   :  { %v1525_v52 = vpop.f32.mrb[12].mxu0  ;;  %v1596_v12 = vpop.f32.mrb[20].mxu1 }
 0x72a   :  { %v1605_v14 = vrot.slane %v1525_v52, 4  ;;  %v1527_v15 = vpop.f32.mrb[13].mxu0  ;;  %v1598_v18 = vpop.f32.mrb[21].mxu1  ;;  %v1607_v32 = vrot.slane %v1596_v12, 4 }
 0x72b   :  { %v1606_v3 = vrot.slane %v1527_v15, 4  ;;  %v1608_v40 = vrot.slane %v1598_v18, 4 }
 0x72c   :  { %v1613_v20 = vadd.f32 %v1605_v14, %v1452_v55  ;;  %v1615_v42 = vadd.f32 %v1607_v32, %v1454_v33 }
 0x72d   :  { %v1614_v23 = vadd.f32 %v1606_v3, %v1453_v22  ;;  %v1616_v19 = vadd.f32 %v1608_v40, %v1455_v7  ;;  %v1646_v40 = vld [vmem:[#allocation2 + $0x28] sm:$0xc0] }
 0x72e   :  { %v2572_v28 = vmul.f32 -1.442695, %v1613_v20  ;;  %v2574_v44 = vmul.f32 -1.442695, %v1615_v42 }
 0x72f   :  { %v2573_v30 = vmul.f32 -1.442695, %v1614_v23 }
 0x730   :  { %3487 = vpow2.f32 %v2572_v28 }
 0x731   :  { %3489 = vpow2.f32 %v2573_v30  ;;  %v1645_v30 = vld [vmem:[#allocation2 + $0x20] sm:$0xc0] }
 0x732   :  { %3491 = vtanh.f32 %v1616_v19 }
 0x733   :  { %3493 = vpow2.f32 %v2574_v44 }
 0x73a   :  { %v3488_v51 = vpop.eup %3487 }
 0x73b   :  { %v1626_v54 = vadd.f32 1.0, %v3488_v51  ;;  %v3490_v27 = vpop.eup %3489  ;;  %v1647_v51 = vld [vmem:[#allocation2 + $0x30] sm:$0xc0] }
 0x73c   :  { %v1627_v58 = vadd.f32 1.0, %v3490_v27  ;;  %v3492_v43 = vpop.eup %3491 }
 0x73d   :  { %3495 = vrcp.f32 %v1626_v54  ;;  %v3494_v62 = vpop.eup %3493 }
 0x73e   :  { %3497 = vrcp.f32 %v1627_v58  ;;  %v1628_v52 = vadd.f32 1.0, %v3494_v62  ;;  %v1648_v58 = vld [vmem:[#allocation2 + $0x38] sm:$0xc0] }
 0x740   :  { %3499 = vrcp.f32 %v1628_v52 }
 0x747   :  { %v3496_v46 = vpop.eup %3495 }
 0x748   :  { %v1640_v5 = vmul.f32 %v3496_v46, %v3492_v43  ;;  %v3498_v6 = vpop.eup %3497 }
 0x749   :  { %v1639_v12 = vmul.f32 %v3498_v6, %v1637_v4 }
 0x74a   :  { %v3500_v15 = vpop.eup %3499 }
 0x74b   :  { %v4095_v14 = vadd.f32 %v1640_v5, %v1639_v12 }
 0x74d   :  { %3501 = vtanh.f32 %v4095_v14 }
 0x757   :  { %v3502_v18 = vpop.eup %3501 }
 0x758   :  { %v1643_v55 = vmul.f32 %v3502_v18, %v3500_v15  ;;  %v1830_v18 = vrot.slane %v4095_v14, 6 }
 0x75a   :  { %1644 = vst [vmem:[#allocation3 + $0x2] sm:$0x30] %v1643_v55  ;;  %v1650_v3 = vrot.slane %v1643_v55, 4 }
 0x75c   :  { %1717 = vmatmul.mubr.f32.vlgmr.msra.gmra.mrb[14].mxu0 %v1650_v3  ;;  %1788 = vmatmul.mubr.f32.vlgmr.msra.gmra.mrb[22].mxu1 %v1650_v3 }
 0x75d   :  { %3166 = vmatpush1.bf16.msra.mxu0 %v3689_v13  ;;  %3198 = vmatpush1.bf16.msra.mxu1 %v3728_v47 }
 0x75e   :  { %3168 = vmatprep.subr.bf16.mxu0 %v3692_v17  ;;  %3200 = vmatprep.subr.bf16.mxu1 %v3733_v49 }
 0x75f   :  { %1909 = vmatprep.mubr.f32.mxu0 %v3602_v0  ;;  %1980 = vmatprep.mubr.f32.mxu1 %v3602_v0 }
 0x761   :  { %3170 = vmatpush1.bf16.msra.mxu0 %v3701_v21  ;;  %3202 = vmatpush1.bf16.msra.mxu1 %v3740_v59 }
 0x762   :  { %3172 = vmatprep.subr.bf16.mxu0 %v3711_v29  ;;  %3204 = vmatprep.subr.bf16.mxu1 %v3747_v61 }
 0x765   :  { %3174 = vmatpush1.bf16.msra.mxu0 %v3720_v37  ;;  %3206 = vmatpush1.bf16.msra.mxu1 %v3754_v9 }
 0x766   :  { %3176 = vmatprep.subr.bf16.mxu0 %v3724_v41  ;;  %3208 = vmatprep.subr.bf16.mxu1 %v3761_v11 }
 0x769   :  { %3178 = vmatpush1.bf16.msra.mxu0 %v3731_v48  ;;  %3210 = vmatpush1.bf16.msra.mxu1 %v3767_v24 }
 0x76a   :  { %3180 = vmatprep.subr.bf16.mxu0 %v3736_v53  ;;  %3212 = vmatprep.subr.bf16.mxu1 %v3773_v26 }
 0x76d   :  { %3182 = vmatpush1.bf16.msra.mxu0 %v3745_v60  ;;  %3214 = vmatpush1.bf16.msra.mxu1 %v3779_v36 }
 0x76e   :  { %3184 = vmatprep.subr.bf16.mxu0 %v3750_v2  ;;  %3216 = vmatprep.subr.bf16.mxu1 %v3785_v39 }
 0x771   :  { %3186 = vmatpush1.bf16.msra.mxu0 %v3759_v10  ;;  %3218 = vmatpush1.bf16.msra.mxu1 %v3789_v45 }
 0x772   :  { %3188 = vmatprep.subr.bf16.mxu0 %v3764_v16  ;;  %3220 = vmatprep.subr.bf16.mxu1 %v3798_v50 }
 0x775   :  { %3190 = vmatpush1.bf16.msra.mxu0 %v3771_v25  ;;  %3222 = vmatpush1.bf16.msra.mxu1 %v3803_v56 }
 0x776   :  { %3192 = vmatprep.subr.bf16.mxu0 %v3776_v31  ;;  %3224 = vmatprep.subr.bf16.mxu1 %v3806_v57 }
 0x779   :  { %3194 = vmatpush1.bf16.msra.mxu0 %v3783_v38  ;;  %3226 = vmatpush1.bf16.msra.mxu1 %v3812_v63 }
 0x77a   :  { %3228 = vmatprep.subr.bf16.mxu0 %v3684_v8  ;;  %3260 = vmatprep.subr.bf16.mxu1 %v3717_v34 }
 0x82f   :  { %v1718_v1 = vpop.f32.mrb[14].mxu0  ;;  %v1789_v20 = vpop.f32.mrb[22].mxu1 }
 0x830   :  { %v1798_v22 = vrot.slane %v1718_v1, 2  ;;  %v1720_v23 = vpop.f32.mrb[15].mxu0  ;;  %v1791_v28 = vpop.f32.mrb[23].mxu1  ;;  %v1800_v44 = vrot.slane %v1789_v20, 2 }
 0x831   :  { %v1799_v32 = vrot.slane %v1720_v23, 2  ;;  %v1801_v54 = vrot.slane %v1791_v28, 2 }
 0x832   :  { %v1806_v33 = vadd.f32 %v1798_v22, %v1645_v30  ;;  %v1808_v27 = vadd.f32 %v1800_v44, %v1647_v51 }
 0x833   :  { %v1807_v42 = vadd.f32 %v1799_v32, %v1646_v40  ;;  %v1809_v43 = vadd.f32 %v1801_v54, %v1648_v58  ;;  %v1839_v54 = vld [vmem:[#allocation2 + $0x28] sm:$0xc0] }
 0x834   :  { %v2575_v7 = vmul.f32 -1.442695, %v1806_v33  ;;  %v2577_v62 = vmul.f32 -1.442695, %v1808_v27 }
 0x835   :  { %v2576_v19 = vmul.f32 -1.442695, %v1807_v42 }
 0x836   :  { %3503 = vpow2.f32 %v2575_v7 }
 0x837   :  { %3505 = vpow2.f32 %v2576_v19  ;;  %v1838_v19 = vld [vmem:[#allocation2 + $0x20] sm:$0xc0] }
 0x838   :  { %3507 = vtanh.f32 %v1809_v43 }
 0x839   :  { %3509 = vpow2.f32 %v2577_v62 }
 0x840   :  { %v3504_v46 = vpop.eup %3503 }
 0x841   :  { %v1819_v4 = vadd.f32 1.0, %v3504_v46  ;;  %v3506_v5 = vpop.eup %3505  ;;  %v1840_v46 = vld [vmem:[#allocation2 + $0x30] sm:$0xc0] }
 0x842   :  { %v1820_v6 = vadd.f32 1.0, %v3506_v5  ;;  %v3508_v52 = vpop.eup %3507  ;;  %v1841_v5 = vld [vmem:[#allocation2 + $0x38] sm:$0xc0] }
 0x843   :  { %3511 = vrcp.f32 %v1819_v4  ;;  %v3510_v12 = vpop.eup %3509 }
 0x844   :  { %3513 = vrcp.f32 %v1820_v6  ;;  %v1821_v1 = vadd.f32 1.0, %v3510_v12 }
 0x846   :  { %3515 = vrcp.f32 %v1821_v1 }
 0x84d   :  { %v3512_v15 = vpop.eup %3511 }
 0x84e   :  { %v1833_v55 = vmul.f32 %v3512_v15, %v3508_v52  ;;  %v3514_v3 = vpop.eup %3513 }
 0x84f   :  { %v1832_v20 = vmul.f32 %v3514_v3, %v1830_v18 }
 0x850   :  { %v3516_v23 = vpop.eup %3515 }
 0x851   :  { %v4133_v22 = vadd.f32 %v1833_v55, %v1832_v20 }
 0x853   :  { %3517 = vtanh.f32 %v4133_v22 }
 0x85d   :  { %v3518_v28 = vpop.eup %3517 }
 0x85e   :  { %v4136_v30 = vmul.f32 %v3518_v28, %v3516_v23 }
 0x860   :  { %1837 = vst [vmem:[#allocation3 + $0x2] sm:$0xc0] %v4136_v30  ;;  %v1843_v32 = vrot.slane %v4136_v30, 6 }
 0x862   :  { %1910 = vmatmul.mubr.f32.vlgmr.msra.gmra.mrb[16].mxu0 %v1843_v32  ;;  %1981 = vmatmul.mubr.f32.vlgmr.msra.gmra.mrb[24].mxu1 %v1843_v32 }
 0x863   :  { %3230 = vmatpush1.bf16.msra.mxu0 %v3689_v13  ;;  %3262 = vmatpush1.bf16.msra.mxu1 %v3728_v47 }
 0x864   :  { %3232 = vmatprep.subr.bf16.mxu0 %v3692_v17  ;;  %3264 = vmatprep.subr.bf16.mxu1 %v3733_v49 }
 0x865   :  { %2104 = vmatprep.mubr.f32.mxu0 %v3602_v0  ;;  %2175 = vmatprep.mubr.f32.mxu1 %v3602_v0 }
 0x867   :  { %3234 = vmatpush1.bf16.msra.mxu0 %v3701_v21  ;;  %3266 = vmatpush1.bf16.msra.mxu1 %v3740_v59 }
 0x868   :  { %3236 = vmatprep.subr.bf16.mxu0 %v3711_v29  ;;  %3268 = vmatprep.subr.bf16.mxu1 %v3747_v61 }
 0x86b   :  { %3238 = vmatpush1.bf16.msra.mxu0 %v3720_v37  ;;  %3270 = vmatpush1.bf16.msra.mxu1 %v3754_v9 }
 0x86c   :  { %3240 = vmatprep.subr.bf16.mxu0 %v3724_v41  ;;  %3272 = vmatprep.subr.bf16.mxu1 %v3761_v11 }
 0x86f   :  { %3242 = vmatpush1.bf16.msra.mxu0 %v3731_v48  ;;  %3274 = vmatpush1.bf16.msra.mxu1 %v3767_v24 }
 0x870   :  { %3244 = vmatprep.subr.bf16.mxu0 %v3736_v53  ;;  %3276 = vmatprep.subr.bf16.mxu1 %v3773_v26 }
 0x873   :  { %3246 = vmatpush1.bf16.msra.mxu0 %v3745_v60  ;;  %3278 = vmatpush1.bf16.msra.mxu1 %v3779_v36 }
 0x874   :  { %3248 = vmatprep.subr.bf16.mxu0 %v3750_v2  ;;  %3280 = vmatprep.subr.bf16.mxu1 %v3785_v39 }
 0x877   :  { %3250 = vmatpush1.bf16.msra.mxu0 %v3759_v10  ;;  %3282 = vmatpush1.bf16.msra.mxu1 %v3789_v45 }
 0x878   :  { %3252 = vmatprep.subr.bf16.mxu0 %v3764_v16  ;;  %3284 = vmatprep.subr.bf16.mxu1 %v3798_v50 }
 0x87b   :  { %3254 = vmatpush1.bf16.msra.mxu0 %v3771_v25  ;;  %3286 = vmatpush1.bf16.msra.mxu1 %v3803_v56 }
 0x87c   :  { %3256 = vmatprep.subr.bf16.mxu0 %v3776_v31  ;;  %3288 = vmatprep.subr.bf16.mxu1 %v3806_v57 }
 0x87f   :  { %3258 = vmatpush1.bf16.msra.mxu0 %v3783_v38  ;;  %3290 = vmatpush1.bf16.msra.mxu1 %v3812_v63 }
 0x880   :  { %3292 = vmatprep.subr.bf16.mxu0 %v3684_v8  ;;  %3324 = vmatprep.subr.bf16.mxu1 %v3717_v34 }
 0x935   :  { %v1911_v14 = vpop.f32.mrb[16].mxu0  ;;  %v1982_v33 = vpop.f32.mrb[24].mxu1 }
 0x936   :  { %v1991_v40 = vrot.slane %v1911_v14, 2  ;;  %v1913_v42 = vpop.f32.mrb[17].mxu0  ;;  %v1984_v7 = vpop.f32.mrb[25].mxu1  ;;  %v1993_v62 = vrot.slane %v1982_v33, 2 }
 0x937   :  { %v1992_v44 = vrot.slane %v1913_v42, 2  ;;  %v1994_v4 = vrot.slane %v1984_v7, 2 }
 0x938   :  { %v1999_v51 = vadd.f32 %v1991_v40, %v1838_v19  ;;  %v2001_v8 = vadd.f32 %v1993_v62, %v1840_v46  ;;  %v2425_v62 = vld [vmem:[%s4299_s6] sm:$0xff]  ;;  %v2426_v46 = vld [vmem:[%s4299_s6 + $0x8] sm:$0xff] }
 0x939   :  { %v2000_v27 = vadd.f32 %v1992_v44, %v1839_v54  ;;  %v2002_v34 = vadd.f32 %v1994_v4, %v1841_v5  ;;  %v3355_v4 = vpack.c.bf16 %v2426_v46, %v2425_v62  ;;  %v2428_v5 = vld [vmem:[%s4299_s6 + $0x18] sm:$0xff] }
 0x93a   :  { %v2578_v58 = vmul.f32 -1.442695, %v1999_v51  ;;  %v2580_v6 = vmul.f32 -1.442695, %v2001_v8  ;;  %v2427_v8 = vld [vmem:[%s4299_s6 + $0x10] sm:$0xff] }
 0x93b   :  { %v2579_v43 = vmul.f32 -1.442695, %v2000_v27 }
 0x93c   :  { %3519 = vpow2.f32 %v2578_v58 }
 0x93d   :  { %3521 = vpow2.f32 %v2579_v43  ;;  %v2423_v43 = vld [vmem:[#allocation3] sm:$0xff] }
 0x93e   :  { %3523 = vtanh.f32 %v2002_v34  ;;  %v3359_v34 = vpack.c.bf16 %v2428_v5, %v2427_v8 }
 0x93f   :  { %3525 = vpow2.f32 %v2580_v6  ;;  %v2429_v6 = vld [vmem:[%s4299_s6 + $0x20] sm:$0xff] }
 0x946   :  { %v3520_v52 = vpop.eup %3519 }
 0x947   :  { %v2012_v12 = vadd.f32 1.0, %v3520_v52  ;;  %v3522_v15 = vpop.eup %3521  ;;  %v2430_v52 = vld [vmem:[%s4299_s6 + $0x28] sm:$0xff] }
 0x948   :  { %v2013_v18 = vadd.f32 1.0, %v3522_v15  ;;  %v3524_v55 = vpop.eup %3523  ;;  %v2431_v15 = vld [vmem:[%s4299_s6 + $0x30] sm:$0xff] }
 0x949   :  { %3527 = vrcp.f32 %v2012_v12  ;;  %v3526_v3 = vpop.eup %3525  ;;  %v3363_v12 = vpack.c.bf16 %v2430_v52, %v2429_v6 }
 0x94a   :  { %3529 = vrcp.f32 %v2013_v18  ;;  %v2014_v28 = vadd.f32 1.0, %v3526_v3  ;;  %v2432_v18 = vld [vmem:[%s4299_s6 + $0x38] sm:$0xff]  ;;  %v2433_v3 = vld [vmem:[%s4299_s6 + $0x40] sm:$0xff] }
 0x94c   :  { %3531 = vrcp.f32 %v2014_v28  ;;  %v2436_v28 = vld [vmem:[%s4299_s6 + $0x58] sm:$0xff] }
 0x953   :  { %v3528_v1 = vpop.eup %3527 }
 0x954   :  { %v2023_v20 = vmul.f32 %v3528_v1, %v3524_v55  ;;  %v3530_v23 = vpop.eup %3529  ;;  %v3367_v55 = vpack.c.bf16 %v2432_v18, %v2431_v15  ;;  %v2434_v1 = vld [vmem:[%s4299_s6 + $0x48] sm:$0xff] }
 0x955   :  { %v2022_v32 = vmul.f32 %v3530_v23, %v4133_v22  ;;  %v2435_v23 = vld [vmem:[%s4299_s6 + $0x50] sm:$0xff] }
 0x956   :  { %v3532_v40 = vpop.eup %3531 }
 0x957   :  { %v2024_v14 = vadd.f32 %v2023_v20, %v2022_v32  ;;  %v3371_v20 = vpack.c.bf16 %v2434_v1, %v2433_v3  ;;  %v3375_v32 = vpack.c.bf16 %v2436_v28, %v2435_v23 }
 0x959   :  { %3533 = vtanh.f32 %v2024_v14  ;;  %v4177_v33 = vsel %vm2027_vm4, %v2024_v14, %v4133_v22  ;;  %v2437_v14 = vld [vmem:[%s4299_s6 + $0x60] sm:$0xff] }
 0x963   :  { %v3534_v42 = vpop.eup %3533 }
 0x964   :  { %v2026_v7 = vmul.f32 %v3534_v42, %v3532_v40  ;;  %v2439_v42 = vld [vmem:[%s4299_s6 + $0x70] sm:$0xff] }
 0x966   :  { %v4180_v19 = vsel %vm2027_vm4, %v2026_v7, %v4136_v30  ;;  %v2440_v7 = vld [vmem:[%s4299_s6 + $0x78] sm:$0xff] }
 0x967   :  { %2032 = vst [vmem:[#allocation3 + $0x4] sm:$0xc0] %v4180_v19  ;;  %v2038_v44 = vrot.slane %v4180_v19, 6 }
 0x969   :  { %2105 = vmatmul.mubr.f32.vlgmr.msra.gmra.mrb[18].mxu0 %v2038_v44  ;;  %2176 = vmatmul.mubr.f32.vlgmr.msra.gmra.mrb[26].mxu1 %v2038_v44 }
 0x96a   :  { %3294 = vmatpush1.bf16.msra.mxu0 %v3689_v13  ;;  %3326 = vmatpush1.bf16.msra.mxu1 %v3728_v47 }
 0x96b   :  { %3296 = vmatprep.subr.bf16.mxu0 %v3692_v17  ;;  %3328 = vmatprep.subr.bf16.mxu1 %v3733_v49 }
 0x96c   :  { %2298 = vmatprep.mubr.f32.mxu0 %v3602_v0  ;;  %2369 = vmatprep.mubr.f32.mxu1 %v3602_v0 }
 0x96e   :  { %3298 = vmatpush1.bf16.msra.mxu0 %v3701_v21  ;;  %3330 = vmatpush1.bf16.msra.mxu1 %v3740_v59 }
 0x96f   :  { %3300 = vmatprep.subr.bf16.mxu0 %v3711_v29  ;;  %3332 = vmatprep.subr.bf16.mxu1 %v3747_v61  ;;  %v2035_v61 = vld [vmem:[#allocation2 + $0x30] sm:$0xc0] }
 0x972   :  { %3302 = vmatpush1.bf16.msra.mxu0 %v3720_v37  ;;  %3334 = vmatpush1.bf16.msra.mxu1 %v3754_v9  ;;  %v2033_v37 = vld [vmem:[#allocation2 + $0x20] sm:$0xc0] }
 0x973   :  { %3304 = vmatprep.subr.bf16.mxu0 %v3724_v41  ;;  %3336 = vmatprep.subr.bf16.mxu1 %v3761_v11 }
 0x976   :  { %3306 = vmatpush1.bf16.msra.mxu0 %v3731_v48  ;;  %3338 = vmatpush1.bf16.msra.mxu1 %v3767_v24  ;;  %v2034_v48 = vld [vmem:[#allocation2 + $0x28] sm:$0xc0] }
 0x977   :  { %3308 = vmatprep.subr.bf16.mxu0 %v3736_v53  ;;  %3340 = vmatprep.subr.bf16.mxu1 %v3773_v26 }
 0x97a   :  { %3310 = vmatpush1.bf16.msra.mxu0 %v3745_v60  ;;  %3342 = vmatpush1.bf16.msra.mxu1 %v3779_v36 }
 0x97b   :  { %3312 = vmatprep.subr.bf16.mxu0 %v3750_v2  ;;  %3344 = vmatprep.subr.bf16.mxu1 %v3785_v39 }
 0x97e   :  { %3314 = vmatpush1.bf16.msra.mxu0 %v3759_v10  ;;  %3346 = vmatpush1.bf16.msra.mxu1 %v3789_v45  ;;  %v2036_v10 = vld [vmem:[#allocation2 + $0x38] sm:$0xc0] }
 0x97f   :  { %3316 = vmatprep.subr.bf16.mxu0 %v3764_v16  ;;  %3348 = vmatprep.subr.bf16.mxu1 %v3798_v50 }
 0x982   :  { %3318 = vmatpush1.bf16.msra.mxu0 %v3771_v25  ;;  %3350 = vmatpush1.bf16.msra.mxu1 %v3803_v56 }
 0x983   :  { %3320 = vmatprep.subr.bf16.mxu0 %v3776_v31  ;;  %3352 = vmatprep.subr.bf16.mxu1 %v3806_v57 }
 0x986   :  { %3322 = vmatpush1.bf16.msra.mxu0 %v3783_v38  ;;  %3354 = vmatpush1.bf16.msra.mxu1 %v3812_v63 }
 0x987   :  { %3356 = vmatprep.subr.bf16.mxu0 %v3355_v4 }
 0xa3c   :  { %v2106_v0 = vpop.f32.mrb[18].mxu0  ;;  %v2177_v13 = vpop.f32.mrb[26].mxu1 }
 0xa3d   :  { %v2186_v17 = vrot.slane %v2106_v0, 2  ;;  %v2108_v21 = vpop.f32.mrb[19].mxu0  ;;  %v2179_v29 = vpop.f32.mrb[27].mxu1  ;;  %v2188_v60 = vrot.slane %v2177_v13, 2 }
 0xa3e   :  { %v2187_v41 = vrot.slane %v2108_v21, 2  ;;  %v2189_v2 = vrot.slane %v2179_v29, 2  ;;  %v2227_v29 = vld [vmem:[#allocation2 + $0x20] sm:$0xc0] }
 0xa3f   :  { %v2194_v47 = vadd.f32 %v2186_v17, %v2033_v37  ;;  %v2196_v9 = vadd.f32 %v2188_v60, %v2035_v61  ;;  %v2229_v60 = vld [vmem:[#allocation2 + $0x30] sm:$0xc0] }
 0xa40   :  { %v2195_v49 = vadd.f32 %v2187_v41, %v2034_v48  ;;  %v2197_v11 = vadd.f32 %v2189_v2, %v2036_v10 }
 0xa41   :  { %v2581_v53 = vmul.f32 -1.442695, %v2194_v47  ;;  %v2583_v16 = vmul.f32 -1.442695, %v2196_v9  ;;  %v2228_v47 = vld [vmem:[#allocation2 + $0x28] sm:$0xc0] }
 0xa42   :  { %v2582_v59 = vmul.f32 -1.442695, %v2195_v49  ;;  %v2230_v9 = vld [vmem:[#allocation2 + $0x38] sm:$0xc0] }
 0xa43   :  { %3535 = vpow2.f32 %v2581_v53 }
 0xa44   :  { %3537 = vpow2.f32 %v2582_v59 }
 0xa45   :  { %3539 = vtanh.f32 %v2197_v11 }
 0xa46   :  { %3541 = vpow2.f32 %v2583_v16 }
 0xa4d   :  { %v3536_v24 = vpop.eup %3535 }
 0xa4e   :  { %v2207_v25 = vadd.f32 1.0, %v3536_v24  ;;  %v3538_v26 = vpop.eup %3537 }
 0xa4f   :  { %v2208_v31 = vadd.f32 1.0, %v3538_v26  ;;  %v3540_v36 = vpop.eup %3539 }
 0xa50   :  { %3543 = vrcp.f32 %v2207_v25  ;;  %v3542_v38 = vpop.eup %3541 }
 0xa51   :  { %3545 = vrcp.f32 %v2208_v31  ;;  %v2209_v56 = vadd.f32 1.0, %v3542_v38 }
 0xa53   :  { %3547 = vrcp.f32 %v2209_v56 }
 0xa5a   :  { %v3544_v39 = vpop.eup %3543 }
 0xa5b   :  { %v2218_v45 = vmul.f32 %v3544_v39, %v3540_v36  ;;  %v3546_v50 = vpop.eup %3545 }
 0xa5c   :  { %v2217_v57 = vmul.f32 %v3546_v50, %v4177_v33 }
 0xa5d   :  { %v3548_v30 = vpop.eup %3547 }
 0xa5e   :  { %v2219_v63 = vadd.f32 %v2218_v45, %v2217_v57 }
 0xa60   :  { %3549 = vtanh.f32 %v2219_v63  ;;  %v4219_v22 = vsel %vm2222_vm5, %v2219_v63, %v4177_v33  ;;  %v2438_v33 = vld [vmem:[%s4299_s6 + $0x68] sm:$0xff] }
 0xa61   :  { %v3379_v40 = vpack.c.bf16 %v2438_v33, %v2437_v14 }
 0xa6a   :  { %v3550_v51 = vpop.eup %3549 }
 0xa6b   :  { %v2221_v54 = vmul.f32 %v3550_v51, %v3548_v30 }
 0xa6d   :  { %v4222_v27 = vsel %vm2222_vm5, %v2221_v54, %v4180_v19  ;;  %v3383_v19 = vpack.c.bf16 %v2440_v7, %v2439_v42 }
 0xa6e   :  { %2226 = vst [vmem:[#allocation3 + $0x6] sm:$0xc0] %v4222_v27  ;;  %v2232_v58 = vrot.slane %v4222_v27, 6 }
 0xa70   :  { %2299 = vmatmul.mubr.f32.vlgmr.msra.gmra.mrb[20].mxu0 %v2232_v58  ;;  %2370 = vmatmul.mubr.f32.vlgmr.msra.gmra.mrb[28].mxu1 %v2232_v58 }
 0xa71   :  { %2640 = vmatprep.mubr.f32.mxu0 %v2423_v43  ;;  %3358 = vmatpush3.bf16.msra.mxu0 %v3355_v4 }
 0xa72   :  { %3360 = vmatprep.subr.bf16.mxu0 %v3359_v34 }
 0xa75   :  { %3362 = vmatpush3.bf16.msra.mxu0 %v3359_v34 }
 0xa76   :  { %3364 = vmatprep.subr.bf16.mxu0 %v3363_v12 }
 0xa79   :  { %3366 = vmatpush3.bf16.msra.mxu0 %v3363_v12 }
 0xa7a   :  { %3368 = vmatprep.subr.bf16.mxu0 %v3367_v55 }
 0xa7d   :  { %3370 = vmatpush3.bf16.msra.mxu0 %v3367_v55 }
 0xa7e   :  { %3372 = vmatprep.subr.bf16.mxu0 %v3371_v20 }
 0xa81   :  { %3374 = vmatpush3.bf16.msra.mxu0 %v3371_v20 }
 0xa82   :  { %3376 = vmatprep.subr.bf16.mxu0 %v3375_v32 }
 0xa85   :  { %3378 = vmatpush3.bf16.msra.mxu0 %v3375_v32 }
 0xa86   :  { %3380 = vmatprep.subr.bf16.mxu0 %v3379_v40 }
 0xa89   :  { %3382 = vmatpush3.bf16.msra.mxu0 %v3379_v40 }
 0xa8a   :  { %3384 = vmatprep.subr.bf16.mxu0 %v3383_v19 }
 0xa8d   :  { %3386 = vmatpush3.bf16.msra.mxu0 %v3383_v19 }
 0xb43   :  { %v2300_v44 = vpop.f32.mrb[20].mxu0  ;;  %v2371_v0 = vpop.f32.mrb[28].mxu1 }
 0xb44   :  { %v2380_v13 = vrot.slane %v2300_v44, 2  ;;  %v2302_v17 = vpop.f32.mrb[21].mxu0  ;;  %v2373_v21 = vpop.f32.mrb[29].mxu1  ;;  %v2382_v59 = vrot.slane %v2371_v0, 2 }
 0xb45   :  { %v2381_v37 = vrot.slane %v2302_v17, 2  ;;  %v2383_v61 = vrot.slane %v2373_v21, 2 }
 0xb46   :  { %v2388_v41 = vadd.f32 %v2380_v13, %v2227_v29  ;;  %v2390_v2 = vadd.f32 %v2382_v59, %v2229_v60 }
 0xb47   :  { %v2389_v48 = vadd.f32 %v2381_v37, %v2228_v47  ;;  %v2391_v10 = vadd.f32 %v2383_v61, %v2230_v9 }
 0xb48   :  { %v2584_v49 = vmul.f32 -1.442695, %v2388_v41  ;;  %v2586_v11 = vmul.f32 -1.442695, %v2390_v2 }
 0xb49   :  { %v2585_v53 = vmul.f32 -1.442695, %v2389_v48 }
 0xb4a   :  { %3551 = vpow2.f32 %v2584_v49 }
 0xb4b   :  { %3553 = vpow2.f32 %v2585_v53 }
 0xb4c   :  { %3555 = vtanh.f32 %v2391_v10 }
 0xb4d   :  { %3557 = vpow2.f32 %v2586_v11 }
 0xb54   :  { %v3552_v16 = vpop.eup %3551 }
 0xb55   :  { %v2401_v24 = vadd.f32 1.0, %v3552_v16  ;;  %v3554_v25 = vpop.eup %3553 }
 0xb56   :  { %v2402_v26 = vadd.f32 1.0, %v3554_v25  ;;  %v3556_v31 = vpop.eup %3555 }
 0xb57   :  { %3559 = vrcp.f32 %v2401_v24  ;;  %v3558_v36 = vpop.eup %3557 }
 0xb58   :  { %3561 = vrcp.f32 %v2402_v26  ;;  %v2403_v50 = vadd.f32 1.0, %v3558_v36 }
 0xb5a   :  { %3563 = vrcp.f32 %v2403_v50 }
 0xb61   :  { %v3560_v38 = vpop.eup %3559 }
 0xb62   :  { %v2412_v39 = vmul.f32 %v3560_v38, %v3556_v31  ;;  %v3562_v45 = vpop.eup %3561 }
 0xb63   :  { %v2411_v56 = vmul.f32 %v3562_v45, %v4219_v22 }
 0xb64   :  { %v3564_v30 = vpop.eup %3563 }
 0xb65   :  { %v2413_v57 = vadd.f32 %v2412_v39, %v2411_v56 }
 0xb67   :  { %3565 = vtanh.f32 %v2413_v57  ;;  %v2418_v63 = vsel %vm2416_vm6, %v2413_v57, %v4219_v22  ;;  %v2587_v22 = vld [vmem:[%s4300_s7] ss:$0 sm:$0xff] }
 0xb68   :  { %2422 = vst [vmem:[%s4303_s10 - $0x6] sm:$0xc0] %v2418_v63 }
 0xb71   :  { %v3566_v51 = vpop.eup %3565 }
 0xb72   :  { %v2415_v54 = vmul.f32 %v3566_v51, %v3564_v30 }
 0xb74   :  { %v2419_v58 = vsel %vm2416_vm6, %v2415_v54, %v4222_v27 }
 0xb75   :  { %2420 = vst [vmem:[#allocation3 + $0x8] sm:$0xc0] %v2419_v58  ;;  %2421 = vst [vmem:[%s4302_s9 - $0x6] sm:$0xc0] %v2419_v58 }
 0xb7c   :  { %v2424_v35 = vld [vmem:[#allocation3 + $0x8] sm:$0xff] }
 0xb7d   :  { %2641 = vmatmul.mubr.f32.vlgmr.msra.gmra.mrb[22].mxu0 %v2424_v35 }
 0xc50   :  { %v2642_v43 = vpop.f32.mrb[22].mxu0 }
 0xc51   :  { %v2520_v62 = vadd.f32 %v2642_v43, %v2587_v22  ;;  %v2514_v46 = vpop.f32.mrb[23].mxu0 }
 0xc52   :  { %v2515_v4 = vadd.f32 %v2587_v22, %v2514_v46 }
 0xc53   :  { %v2589_v8 = vmul.f32 -1.442695, %v2520_v62 }
 0xc54   :  { %v2588_v5 = vmul.f32 -1.442695, %v2515_v4 }
 0xc55   :  { %3567 = vpow2.f32 %v2589_v8 }
 0xc56   :  { %3569 = vpow2.f32 %v2588_v5 }
 0xc5f   :  { %v3568_v27 = vpop.eup %3567 }
 0xc60   :  { %v3570_v34 = vpop.eup %3569  ;;  %v2530_v6 = vadd.f32 1.0, %v3568_v27 }
 0xc61   :  { %v2529_v52 = vadd.f32 1.0, %v3570_v34 }
 0xc62   :  { %3571 = vrcp.f32 %v2530_v6 }
 0xc63   :  { %3573 = vrcp.f32 %v2529_v52 }
 0xc6c   :  { %v3572_v12 = vpop.eup %3571 }
 0xc6d   :  { %v3574_v15 = vpop.eup %3573  ;;  %2536 = vst [vmem:[%s4301_s8 + $0x8] sm:$0xff] %v3572_v12 }
 0xc6e   :  { %2535 = vst [vmem:[%s4301_s8] sm:$0xff] %v3574_v15 }
 0xc6f   :  { %2549 = vsyncpa [#allocation5], 1 }

</bundles_post_ra>
